<compile_context>
chip_gen: v7x
topology: tpu7x:2x2x1
jax: 0.10.0
libtpu: 0.0.40
codegen_flags: <defaults>
</compile_context>

<pallas_src>
import math

import jax
import jax.numpy as jnp
from jax.experimental import pallas as pl
from jax.experimental.pallas import tpu as pltpu

LN_EPS = 1e-5


def _cdiv(a, b):
    return -(-a // b)


def _round_up(x, m):
    return (x + m - 1) // m * m


def _layernorm(x, gamma, beta):
    # Two-pass LayerNorm (matches torch.nn.LayerNorm): the extra cross-lane
    # reduction rides the idle XLU slot -- the kernel is HBM/overhead-bound.
    mean = jnp.mean(x, axis=-1, keepdims=True)
    c = x - mean
    var = jnp.mean(c * c, axis=-1, keepdims=True)
    return c * jax.lax.rsqrt(var + LN_EPS) * gamma + beta


def actor_kernel(
    feat_ref, prop_ref,
    w0_ref, b0_ref, g0_ref, be0_ref,   # compress: Linear + LayerNorm
    w1_ref, b1_ref, g1_ref, be1_ref,   # policy layer 1 (single K-merged matmul)
    w2_ref, b2_ref, g2_ref, be2_ref,   # policy layer 2
    w3_ref, b3_ref,                    # policy head
    mu_ref,
):
    cdt = w0_ref.dtype                 # MXU operand dtype (bf16)

    # feat arrives f32 straight from HBM (no extra wrapper astype/pad pass);
    # cast to bf16 here, accumulate in f32 everywhere.
    feat = feat_ref[...].astype(cdt)
    prop = prop_ref[...]

    # compress: Linear -> LayerNorm -> Dropout(p=0, identity) -> ReLU
    h = jnp.dot(feat, w0_ref[...], preferred_element_type=jnp.float32) + b0_ref[...]
    h = jnp.maximum(_layernorm(h, g0_ref[...], be0_ref[...]), 0.0)

    # policy layer 1 on concat([h, prop]); build x1 directly in the MXU operand
    # dtype so the lane-concat moves half the bytes and no f32 x1 materializes.
    x1 = jnp.concatenate([h.astype(cdt), prop.astype(cdt)], axis=-1)
    h1 = jnp.dot(x1, w1_ref[...], preferred_element_type=jnp.float32) + b1_ref[...]
    h1 = jnp.maximum(_layernorm(h1, g1_ref[...], be1_ref[...]), 0.0)

    # policy layer 2
    h2 = jnp.dot(h1.astype(cdt), w2_ref[...],
                 preferred_element_type=jnp.float32) + b2_ref[...]
    h2 = jnp.maximum(_layernorm(h2, g2_ref[...], be2_ref[...]), 0.0)

    # head: Linear -> Tanh
    mu = jnp.tanh(jnp.dot(h2.astype(cdt), w3_ref[...],
                          preferred_element_type=jnp.float32) + b3_ref[...])
    mu_ref[...] = mu.astype(mu_ref.dtype)


# ----------------------------- VMEM budgeting --------------------------------

def _vmem_budget_bytes():
    # ~75% of per-core physical VMEM: v5e/v6e 128 MiB -> 96 MiB, v7x 64 MiB ->
    # 48 MiB. Falls back to the smallest (v7x) assumption if the query fails.
    cap = 64 * 1024 * 1024
    try:
        info = pltpu.get_tpu_info()
        cap = int(getattr(info, "vmem_capacity_bytes", cap))
    except Exception:
        pass
    return cap * 3 // 4


def _padded_2d_bytes(rows, cols, itemsize):
    return _round_up(max(rows, 1), 8) * _round_up(max(cols, 1), 128) * itemsize


def _activation_vmem_per_row(repr_dim, prop_dim, feature_dim, hidden_dim, action_dim):
    lane = lambda d: _round_up(d, 128)
    f32, bf16 = 4, 2
    # Double-buffered f32 input/output pipeline blocks (lane-padded in VMEM).
    io = 2 * (lane(repr_dim) + lane(prop_dim) + lane(action_dim)) * f32
    # In-kernel intermediates (f32 activations + bf16 MXU-operand copies).
    inter = (lane(repr_dim) * bf16
             + lane(feature_dim) * (f32 + bf16)
             + lane(feature_dim + prop_dim) * bf16
             + 2 * lane(hidden_dim) * (f32 + bf16)
             + lane(action_dim) * f32)
    return io + inter * 3 // 2          # 1.5x fudge for LN temps / layout copies


def _choose_tile_b(B, dims, weight_vmem, budget, requested):
    per_row = _activation_vmem_per_row(*dims)
    avail = max(budget - weight_vmem, per_row * 16)
    max_tile = max(16, (avail // per_row) // 16 * 16)
    if requested is not None:
        tile_b = max(16, _round_up(int(requested), 16))
    else:
        # Large per-step tiles (~8k rows) amortize the ~0.35us grid-step
        # overhead; keep >= 2 steps when there is enough work so both v7x
        # TensorCores get a share of the "parallel" batch axis.
        target_rows = 8192
        n_steps = max(2, _cdiv(B, target_rows)) if B >= 32 else 1
        tile_b = _round_up(_cdiv(B, n_steps), 16)
    return min(tile_b, max_tile)


# --------------------------------- wrapper ------------------------------------

def actor_forward(feat, prop, params, *, tile_b=None, compute_dtype=jnp.bfloat16):
    """feat: (B, num_patch, patch_repr_dim); prop: (B, prop_dim). Returns mu: (B, action_dim) f32."""
    B = feat.shape[0]
    feat_flat = feat.reshape(B, -1)     # torch: obs['feat'].flatten(1, -1); layout-only
    repr_dim = feat_flat.shape[1]
    prop_dim = prop.shape[1]
    feature_dim = params["w0"].shape[1]
    hidden_dim = params["w1"].shape[1]
    action_dim = params["w3"].shape[1]
    dims = (repr_dim, prop_dim, feature_dim, hidden_dim, action_dim)

    # Weights/biases/LN params are tiny and stay resident; only matmul operands
    # are pre-cast to bf16 (feat itself is NOT cast or padded in the wrapper).
    weight_args = (
        params["w0"].astype(compute_dtype), params["b0"], params["g0"], params["be0"],
        params["w1"].astype(compute_dtype), params["b1"], params["g1"], params["be1"],
        params["w2"].astype(compute_dtype), params["b2"], params["g2"], params["be2"],
        params["w3"].astype(compute_dtype), params["b3"],
    )

    budget = _vmem_budget_bytes()
    weight_vmem = sum(_padded_2d_bytes(w.shape[0], w.shape[1], w.dtype.itemsize)
                      for w in weight_args)
    tile_b = _choose_tile_b(B, dims, weight_vmem, budget, tile_b)

    # Ragged last block instead of jnp.pad: OOB output rows are masked on write.
    grid = (_cdiv(B, tile_b),)

    flops = 2 * B * (repr_dim * feature_dim
                     + (feature_dim + prop_dim) * hidden_dim
                     + hidden_dim * hidden_dim
                     + hidden_dim * action_dim)
    weight_bytes = sum(math.prod(w.shape) * w.dtype.itemsize for w in weight_args)
    cost = pl.CostEstimate(
        flops=int(flops),
        transcendentals=int(B * (action_dim + 3)),            # tanh + 3 rsqrt per row
        bytes_accessed=int(4 * B * (repr_dim + prop_dim + action_dim) + weight_bytes),
    )

    out_specs = pl.BlockSpec((tile_b, action_dim), lambda i: (i, 0))

    def build_in_specs(single_buffer_weights):
        if single_buffer_weights:
            wspec = lambda a: pl.BlockSpec(a.shape, lambda i: (0, 0),
                                           pipeline_mode=pl.Buffered(1))
        else:
            wspec = lambda a: pl.BlockSpec(a.shape, lambda i: (0, 0))
        return ([pl.BlockSpec((tile_b, repr_dim), lambda i: (i, 0)),
                 pl.BlockSpec((tile_b, prop_dim), lambda i: (i, 0))]
                + [wspec(w) for w in weight_args])

    def run(single_buffer_weights):
        return pl.pallas_call(
            actor_kernel,
            out_shape=jax.ShapeDtypeStruct((B, action_dim), jnp.float32),
            grid=grid,
            in_specs=build_in_specs(single_buffer_weights),
            out_specs=out_specs,
            compiler_params=pltpu.CompilerParams(
                dimension_semantics=("parallel",),   # batch axis -> v7x megacore
                vmem_limit_bytes=budget),
            cost_estimate=cost,
        )(feat_flat, prop, *weight_args)

    try:
        # Constant-index weights: single pipeline buffer (second buffer is waste).
        return run(True)
    except Exception:
        # Fallback if this jax build rejects pipeline_mode / Buffered(1); the
        # double-buffered weights only cost a few extra KiB at these dims.
        return run(False)


# --------------------------- params & reference --------------------------------

def init_params(key, repr_dim, prop_dim, feature_dim, hidden_dim, action_dim):
    """Deterministic synthetic init. Linear weights stored as (in_dim, out_dim), f32 master copy."""
    ks = jax.random.split(key, 4)

    def lin(k, d_in, d_out):
        scale = 1.0 / jnp.sqrt(jnp.float32(d_in))
        w = jax.random.normal(k, (d_in, d_out), jnp.float32) * scale
        b = jnp.zeros((1, d_out), jnp.float32)
        return w, b

    w0, b0 = lin(ks[0], repr_dim, feature_dim)
    w1, b1 = lin(ks[1], feature_dim + prop_dim, hidden_dim)
    w2, b2 = lin(ks[2], hidden_dim, hidden_dim)
    w3, b3 = lin(ks[3], hidden_dim, action_dim)

    return {
        "w0": w0, "b0": b0,
        "g0": jnp.ones((1, feature_dim), jnp.float32), "be0": jnp.zeros((1, feature_dim), jnp.float32),
        "w1": w1, "b1": b1,
        "g1": jnp.ones((1, hidden_dim), jnp.float32), "be1": jnp.zeros((1, hidden_dim), jnp.float32),
        "w2": w2, "b2": b2,
        "g2": jnp.ones((1, hidden_dim), jnp.float32), "be2": jnp.zeros((1, hidden_dim), jnp.float32),
        "w3": w3, "b3": b3,
    }


def actor_reference(feat, prop, params, matmul_dtype=jnp.float32):
    """Plain-JAX reference mirroring the torch forward; matmul_dtype lets us
    match the kernel's bf16-operand / f32-accumulate strategy for a tight check."""
    def mm(x, w):
        return jnp.dot(x.astype(matmul_dtype), w.astype(matmul_dtype),
                       preferred_element_type=jnp.float32)

    x = feat.reshape(feat.shape[0], -1)
    h = mm(x, params["w0"]) + params["b0"]
    h = jnp.maximum(_layernorm(h, params["g0"], params["be0"]), 0.0)
    x1 = jnp.concatenate([h, prop], axis=-1)
    h1 = jnp.maximum(_layernorm(mm(x1, params["w1"]) + params["b1"],
                                params["g1"], params["be1"]), 0.0)
    h2 = jnp.maximum(_layernorm(mm(h1, params["w2"]) + params["b2"],
                                params["g2"], params["be2"]), 0.0)
    return jnp.tanh(mm(h2, params["w3"]) + params["b3"])


if __name__ == "__main__":
    # Small shapes consistent with the module:
    B, num_patch, patch_repr_dim = 8, 4, 32   # repr_dim = 128
    prop_dim, feature_dim, hidden_dim, action_dim = 16, 32, 64, 8
    std = 0.1

    key = jax.random.PRNGKey(0)
    k_feat, k_prop, k_par = jax.random.split(key, 3)
    feat = jax.random.normal(k_feat, (B, num_patch, patch_repr_dim), jnp.float32)
    prop = jax.random.normal(k_prop, (B, prop_dim), jnp.float32)
    params = init_params(k_par, num_patch * patch_repr_dim, prop_dim,
                         feature_dim, hidden_dim, action_dim)

    mu = jax.block_until_ready(actor_forward(feat, prop, params))
    assert mu.shape == (B, action_dim)

    # TODO(synk): utils.TruncatedNormal is a distribution object; the kernel
    # computes mu, and (mu, std) parameterize the distribution downstream.
    ref_bf16 = actor_reference(feat, prop, params, matmul_dtype=jnp.bfloat16)
    ref_f32 = actor_reference(feat, prop, params, matmul_dtype=jnp.float32)
    assert jnp.allclose(mu, ref_bf16, rtol=5e-3, atol=5e-3)   # dtype-matched reference
    assert jnp.allclose(mu, ref_f32, rtol=5e-2, atol=5e-2)    # exact f32 torch math

    # Multi-step grid with a ragged last block (no wrapper-side padding).
    B2 = 40
    k2f, k2p = jax.random.split(jax.random.PRNGKey(1), 2)
    feat2 = jax.random.normal(k2f, (B2, num_patch, patch_repr_dim), jnp.float32)
    prop2 = jax.random.normal(k2p, (B2, prop_dim), jnp.float32)
    ref2 = actor_reference(feat2, prop2, params, matmul_dtype=jnp.bfloat16)

    mu2 = jax.block_until_ready(actor_forward(feat2, prop2, params))             # auto tile: 2 steps
    mu3 = jax.block_until_ready(actor_forward(feat2, prop2, params, tile_b=16))  # 3 steps, ragged
    assert mu2.shape == (B2, action_dim) and mu3.shape == (B2, action_dim)
    assert jnp.allclose(mu2, ref2, rtol=5e-3, atol=5e-3)
    assert jnp.allclose(mu3, ref2, rtol=5e-3, atol=5e-3)

    print("KERNEL_OK")
</pallas_src>

<mosaic_0001>
module attributes {stable_mosaic.version = 11 : i64} {
  func.func @actor_kernel(%arg0: i32, %arg1: memref<16x128xf32, #tpu.memory_space<vmem>>, %arg2: memref<16x16xf32, #tpu.memory_space<vmem>>, %arg3: memref<128x32xbf16, #tpu.memory_space<vmem>>, %arg4: memref<1x32xf32, #tpu.memory_space<vmem>>, %arg5: memref<1x32xf32, #tpu.memory_space<vmem>>, %arg6: memref<1x32xf32, #tpu.memory_space<vmem>>, %arg7: memref<48x64xbf16, #tpu.memory_space<vmem>>, %arg8: memref<1x64xf32, #tpu.memory_space<vmem>>, %arg9: memref<1x64xf32, #tpu.memory_space<vmem>>, %arg10: memref<1x64xf32, #tpu.memory_space<vmem>>, %arg11: memref<64x64xbf16, #tpu.memory_space<vmem>>, %arg12: memref<1x64xf32, #tpu.memory_space<vmem>>, %arg13: memref<1x64xf32, #tpu.memory_space<vmem>>, %arg14: memref<1x64xf32, #tpu.memory_space<vmem>>, %arg15: memref<64x8xbf16, #tpu.memory_space<vmem>>, %arg16: memref<1x8xf32, #tpu.memory_space<vmem>>, %arg17: memref<16x8xf32, #tpu.memory_space<vmem>>) attributes {dimension_semantics = [#tpu.dimension_semantics<parallel>], iteration_bounds = array<i64: 1>, scalar_prefetch = 0 : i64, scratch_operands = 0 : i64, tpu.core_type = #tpu.core_type<tc>, window_params = [{transform_indices = @transform_0, window_bounds = array<i64: 16, 128>}, {transform_indices = @transform_1, window_bounds = array<i64: 16, 16>}, {pipeline_mode = #tpu.pipeline_mode<synchronous>, transform_indices = @transform_2, window_bounds = array<i64: 128, 32>}, {pipeline_mode = #tpu.pipeline_mode<synchronous>, transform_indices = @transform_3, window_bounds = array<i64: 1, 32>}, {pipeline_mode = #tpu.pipeline_mode<synchronous>, transform_indices = @transform_4, window_bounds = array<i64: 1, 32>}, {pipeline_mode = #tpu.pipeline_mode<synchronous>, transform_indices = @transform_5, window_bounds = array<i64: 1, 32>}, {pipeline_mode = #tpu.pipeline_mode<synchronous>, transform_indices = @transform_6, window_bounds = array<i64: 48, 64>}, {pipeline_mode = #tpu.pipeline_mode<synchronous>, transform_indices = @transform_7, window_bounds = array<i64: 1, 64>}, {pipeline_mode = #tpu.pipeline_mode<synchronous>, transform_indices = @transform_8, window_bounds = array<i64: 1, 64>}, {pipeline_mode = #tpu.pipeline_mode<synchronous>, transform_indices = @transform_9, window_bounds = array<i64: 1, 64>}, {pipeline_mode = #tpu.pipeline_mode<synchronous>, transform_indices = @transform_10, window_bounds = array<i64: 64, 64>}, {pipeline_mode = #tpu.pipeline_mode<synchronous>, transform_indices = @transform_11, window_bounds = array<i64: 1, 64>}, {pipeline_mode = #tpu.pipeline_mode<synchronous>, transform_indices = @transform_12, window_bounds = array<i64: 1, 64>}, {pipeline_mode = #tpu.pipeline_mode<synchronous>, transform_indices = @transform_13, window_bounds = array<i64: 1, 64>}, {pipeline_mode = #tpu.pipeline_mode<synchronous>, transform_indices = @transform_14, window_bounds = array<i64: 64, 8>}, {pipeline_mode = #tpu.pipeline_mode<synchronous>, transform_indices = @transform_15, window_bounds = array<i64: 1, 8>}, {transform_indices = @transform_16, window_bounds = array<i64: 16, 8>}]} {
    %c0 = arith.constant 0 : index
    %c0_0 = arith.constant 0 : index
    %0 = vector.load %arg1[%c0, %c0_0] : memref<16x128xf32, #tpu.memory_space<vmem>>, vector<16x128xf32>
    %1 = arith.truncf %0 : vector<16x128xf32> to vector<16x128xbf16>
    %c0_1 = arith.constant 0 : index
    %c0_2 = arith.constant 0 : index
    %2 = vector.load %arg2[%c0_1, %c0_2] : memref<16x16xf32, #tpu.memory_space<vmem>>, vector<16x16xf32>
    %c0_3 = arith.constant 0 : index
    %c0_4 = arith.constant 0 : index
    %3 = vector.load %arg3[%c0_3, %c0_4] : memref<128x32xbf16, #tpu.memory_space<vmem>>, vector<128x32xbf16>
    %cst = arith.constant dense<0.000000e+00> : vector<16x32xf32>
    %4 = tpu.matmul %1, %3, %cst {dimension_numbers = #tpu.dot_dimension_numbers<[1], [0], [0], [1], [0, 0, 1, 1], [], []>} : vector<16x128xbf16>, vector<128x32xbf16>, vector<16x32xf32> -> vector<16x32xf32>
    %c0_5 = arith.constant 0 : index
    %c0_6 = arith.constant 0 : index
    %5 = vector.load %arg4[%c0_5, %c0_6] : memref<1x32xf32, #tpu.memory_space<vmem>>, vector<1x32xf32>
    %6 = vector.broadcast %5 : vector<1x32xf32> to vector<16x32xf32>
    %7 = arith.addf %4, %6 : vector<16x32xf32>
    %c0_7 = arith.constant 0 : index
    %c0_8 = arith.constant 0 : index
    %8 = vector.load %arg5[%c0_7, %c0_8] : memref<1x32xf32, #tpu.memory_space<vmem>>, vector<1x32xf32>
    %c0_9 = arith.constant 0 : index
    %c0_10 = arith.constant 0 : index
    %9 = vector.load %arg6[%c0_9, %c0_10] : memref<1x32xf32, #tpu.memory_space<vmem>>, vector<1x32xf32>
    %cst_11 = arith.constant dense<0.000000e+00> : vector<16xf32>
    %10 = vector.multi_reduction <add>, %7, %cst_11 [1] : vector<16x32xf32> to vector<16xf32>
    %11 = vector.shape_cast %10 : vector<16xf32> to vector<16x1xf32>
    %cst_12 = arith.constant 3.200000e+01 : f32
    %12 = vector.broadcast %cst_12 : f32 to vector<16x1xf32>
    %13 = arith.divf %11, %12 : vector<16x1xf32>
    %14 = vector.broadcast %13 : vector<16x1xf32> to vector<16x32xf32>
    %15 = arith.subf %7, %14 : vector<16x32xf32>
    %16 = arith.mulf %15, %15 : vector<16x32xf32>
    %cst_13 = arith.constant dense<0.000000e+00> : vector<16xf32>
    %17 = vector.multi_reduction <add>, %16, %cst_13 [1] : vector<16x32xf32> to vector<16xf32>
    %18 = vector.shape_cast %17 : vector<16xf32> to vector<16x1xf32>
    %cst_14 = arith.constant 3.200000e+01 : f32
    %19 = vector.broadcast %cst_14 : f32 to vector<16x1xf32>
    %20 = arith.divf %18, %19 : vector<16x1xf32>
    %cst_15 = arith.constant 9.99999974E-6 : f32
    %21 = vector.broadcast %cst_15 : f32 to vector<16x1xf32>
    %22 = arith.addf %20, %21 : vector<16x1xf32>
    %23 = math.rsqrt %22 : vector<16x1xf32>
    %24 = vector.broadcast %23 : vector<16x1xf32> to vector<16x32xf32>
    %25 = arith.mulf %15, %24 : vector<16x32xf32>
    %26 = vector.broadcast %8 : vector<1x32xf32> to vector<16x32xf32>
    %27 = arith.mulf %25, %26 : vector<16x32xf32>
    %28 = vector.broadcast %9 : vector<1x32xf32> to vector<16x32xf32>
    %29 = arith.addf %27, %28 : vector<16x32xf32>
    %cst_16 = arith.constant 0.000000e+00 : f32
    %30 = vector.broadcast %cst_16 : f32 to vector<16x32xf32>
    %31 = arith.maximumf %29, %30 : vector<16x32xf32>
    %32 = arith.truncf %31 : vector<16x32xf32> to vector<16x32xbf16>
    %33 = arith.truncf %2 : vector<16x16xf32> to vector<16x16xbf16>
    %34 = tpu.concatenate %32, %33 in 1 : vector<16x32xbf16>, vector<16x16xbf16> -> vector<16x48xbf16>
    %c0_17 = arith.constant 0 : index
    %c0_18 = arith.constant 0 : index
    %35 = vector.load %arg7[%c0_17, %c0_18] : memref<48x64xbf16, #tpu.memory_space<vmem>>, vector<48x64xbf16>
    %cst_19 = arith.constant dense<0.000000e+00> : vector<16x64xf32>
    %36 = tpu.matmul %34, %35, %cst_19 {dimension_numbers = #tpu.dot_dimension_numbers<[1], [0], [0], [1], [0, 0, 1, 1], [], []>} : vector<16x48xbf16>, vector<48x64xbf16>, vector<16x64xf32> -> vector<16x64xf32>
    %c0_20 = arith.constant 0 : index
    %c0_21 = arith.constant 0 : index
    %37 = vector.load %arg8[%c0_20, %c0_21] : memref<1x64xf32, #tpu.memory_space<vmem>>, vector<1x64xf32>
    %38 = vector.broadcast %37 : vector<1x64xf32> to vector<16x64xf32>
    %39 = arith.addf %36, %38 : vector<16x64xf32>
    %c0_22 = arith.constant 0 : index
    %c0_23 = arith.constant 0 : index
    %40 = vector.load %arg9[%c0_22, %c0_23] : memref<1x64xf32, #tpu.memory_space<vmem>>, vector<1x64xf32>
    %c0_24 = arith.constant 0 : index
    %c0_25 = arith.constant 0 : index
    %41 = vector.load %arg10[%c0_24, %c0_25] : memref<1x64xf32, #tpu.memory_space<vmem>>, vector<1x64xf32>
    %cst_26 = arith.constant dense<0.000000e+00> : vector<16xf32>
    %42 = vector.multi_reduction <add>, %39, %cst_26 [1] : vector<16x64xf32> to vector<16xf32>
    %43 = vector.shape_cast %42 : vector<16xf32> to vector<16x1xf32>
    %cst_27 = arith.constant 6.400000e+01 : f32
    %44 = vector.broadcast %cst_27 : f32 to vector<16x1xf32>
    %45 = arith.divf %43, %44 : vector<16x1xf32>
    %46 = vector.broadcast %45 : vector<16x1xf32> to vector<16x64xf32>
    %47 = arith.subf %39, %46 : vector<16x64xf32>
    %48 = arith.mulf %47, %47 : vector<16x64xf32>
    %cst_28 = arith.constant dense<0.000000e+00> : vector<16xf32>
    %49 = vector.multi_reduction <add>, %48, %cst_28 [1] : vector<16x64xf32> to vector<16xf32>
    %50 = vector.shape_cast %49 : vector<16xf32> to vector<16x1xf32>
    %cst_29 = arith.constant 6.400000e+01 : f32
    %51 = vector.broadcast %cst_29 : f32 to vector<16x1xf32>
    %52 = arith.divf %50, %51 : vector<16x1xf32>
    %cst_30 = arith.constant 9.99999974E-6 : f32
    %53 = vector.broadcast %cst_30 : f32 to vector<16x1xf32>
    %54 = arith.addf %52, %53 : vector<16x1xf32>
    %55 = math.rsqrt %54 : vector<16x1xf32>
    %56 = vector.broadcast %55 : vector<16x1xf32> to vector<16x64xf32>
    %57 = arith.mulf %47, %56 : vector<16x64xf32>
    %58 = vector.broadcast %40 : vector<1x64xf32> to vector<16x64xf32>
    %59 = arith.mulf %57, %58 : vector<16x64xf32>
    %60 = vector.broadcast %41 : vector<1x64xf32> to vector<16x64xf32>
    %61 = arith.addf %59, %60 : vector<16x64xf32>
    %cst_31 = arith.constant 0.000000e+00 : f32
    %62 = vector.broadcast %cst_31 : f32 to vector<16x64xf32>
    %63 = arith.maximumf %61, %62 : vector<16x64xf32>
    %64 = arith.truncf %63 : vector<16x64xf32> to vector<16x64xbf16>
    %c0_32 = arith.constant 0 : index
    %c0_33 = arith.constant 0 : index
    %65 = vector.load %arg11[%c0_32, %c0_33] : memref<64x64xbf16, #tpu.memory_space<vmem>>, vector<64x64xbf16>
    %cst_34 = arith.constant dense<0.000000e+00> : vector<16x64xf32>
    %66 = tpu.matmul %64, %65, %cst_34 {dimension_numbers = #tpu.dot_dimension_numbers<[1], [0], [0], [1], [0, 0, 1, 1], [], []>} : vector<16x64xbf16>, vector<64x64xbf16>, vector<16x64xf32> -> vector<16x64xf32>
    %c0_35 = arith.constant 0 : index
    %c0_36 = arith.constant 0 : index
    %67 = vector.load %arg12[%c0_35, %c0_36] : memref<1x64xf32, #tpu.memory_space<vmem>>, vector<1x64xf32>
    %68 = vector.broadcast %67 : vector<1x64xf32> to vector<16x64xf32>
    %69 = arith.addf %66, %68 : vector<16x64xf32>
    %c0_37 = arith.constant 0 : index
    %c0_38 = arith.constant 0 : index
    %70 = vector.load %arg13[%c0_37, %c0_38] : memref<1x64xf32, #tpu.memory_space<vmem>>, vector<1x64xf32>
    %c0_39 = arith.constant 0 : index
    %c0_40 = arith.constant 0 : index
    %71 = vector.load %arg14[%c0_39, %c0_40] : memref<1x64xf32, #tpu.memory_space<vmem>>, vector<1x64xf32>
    %cst_41 = arith.constant dense<0.000000e+00> : vector<16xf32>
    %72 = vector.multi_reduction <add>, %69, %cst_41 [1] : vector<16x64xf32> to vector<16xf32>
    %73 = vector.shape_cast %72 : vector<16xf32> to vector<16x1xf32>
    %cst_42 = arith.constant 6.400000e+01 : f32
    %74 = vector.broadcast %cst_42 : f32 to vector<16x1xf32>
    %75 = arith.divf %73, %74 : vector<16x1xf32>
    %76 = vector.broadcast %75 : vector<16x1xf32> to vector<16x64xf32>
    %77 = arith.subf %69, %76 : vector<16x64xf32>
    %78 = arith.mulf %77, %77 : vector<16x64xf32>
    %cst_43 = arith.constant dense<0.000000e+00> : vector<16xf32>
    %79 = vector.multi_reduction <add>, %78, %cst_43 [1] : vector<16x64xf32> to vector<16xf32>
    %80 = vector.shape_cast %79 : vector<16xf32> to vector<16x1xf32>
    %cst_44 = arith.constant 6.400000e+01 : f32
    %81 = vector.broadcast %cst_44 : f32 to vector<16x1xf32>
    %82 = arith.divf %80, %81 : vector<16x1xf32>
    %cst_45 = arith.constant 9.99999974E-6 : f32
    %83 = vector.broadcast %cst_45 : f32 to vector<16x1xf32>
    %84 = arith.addf %82, %83 : vector<16x1xf32>
    %85 = math.rsqrt %84 : vector<16x1xf32>
    %86 = vector.broadcast %85 : vector<16x1xf32> to vector<16x64xf32>
    %87 = arith.mulf %77, %86 : vector<16x64xf32>
    %88 = vector.broadcast %70 : vector<1x64xf32> to vector<16x64xf32>
    %89 = arith.mulf %87, %88 : vector<16x64xf32>
    %90 = vector.broadcast %71 : vector<1x64xf32> to vector<16x64xf32>
    %91 = arith.addf %89, %90 : vector<16x64xf32>
    %cst_46 = arith.constant 0.000000e+00 : f32
    %92 = vector.broadcast %cst_46 : f32 to vector<16x64xf32>
    %93 = arith.maximumf %91, %92 : vector<16x64xf32>
    %94 = arith.truncf %93 : vector<16x64xf32> to vector<16x64xbf16>
    %c0_47 = arith.constant 0 : index
    %c0_48 = arith.constant 0 : index
    %95 = vector.load %arg15[%c0_47, %c0_48] : memref<64x8xbf16, #tpu.memory_space<vmem>>, vector<64x8xbf16>
    %cst_49 = arith.constant dense<0.000000e+00> : vector<16x8xf32>
    %96 = tpu.matmul %94, %95, %cst_49 {dimension_numbers = #tpu.dot_dimension_numbers<[1], [0], [0], [1], [0, 0, 1, 1], [], []>} : vector<16x64xbf16>, vector<64x8xbf16>, vector<16x8xf32> -> vector<16x8xf32>
    %c0_50 = arith.constant 0 : index
    %c0_51 = arith.constant 0 : index
    %97 = vector.load %arg16[%c0_50, %c0_51] : memref<1x8xf32, #tpu.memory_space<vmem>>, vector<1x8xf32>
    %98 = vector.broadcast %97 : vector<1x8xf32> to vector<16x8xf32>
    %99 = arith.addf %96, %98 : vector<16x8xf32>
    %100 = math.tanh %99 : vector<16x8xf32>
    %c0_52 = arith.constant 0 : index
    %c0_53 = arith.constant 0 : index
    %101 = vector.load %arg17[%c0_52, %c0_53] : memref<16x8xf32, #tpu.memory_space<vmem>>, vector<16x8xf32>
    tpu.vector_store %arg17[%c0_52, %c0_53], %100 {strides = array<i32>} : memref<16x8xf32, #tpu.memory_space<vmem>>, vector<16x8xf32>,
    return
  }
  func.func @transform_0(%arg0: i32) -> (i32, i32) {
    %c0_i32 = arith.constant 0 : i32
    %c0_i32_0 = arith.constant 0 : i32
    return %arg0, %c0_i32 : i32, i32
  }
  func.func @transform_1(%arg0: i32) -> (i32, i32) {
    %c0_i32 = arith.constant 0 : i32
    %c0_i32_0 = arith.constant 0 : i32
    return %arg0, %c0_i32 : i32, i32
  }
  func.func @transform_2(%arg0: i32) -> (i32, i32) {
    %c0_i32 = arith.constant 0 : i32
    %c0_i32_0 = arith.constant 0 : i32
    %c0_i32_1 = arith.constant 0 : i32
    return %c0_i32, %c0_i32_0 : i32, i32
  }
  func.func @transform_3(%arg0: i32) -> (i32, i32) {
    %c0_i32 = arith.constant 0 : i32
    %c0_i32_0 = arith.constant 0 : i32
    %c0_i32_1 = arith.constant 0 : i32
    return %c0_i32, %c0_i32_0 : i32, i32
  }
  func.func @transform_4(%arg0: i32) -> (i32, i32) {
    %c0_i32 = arith.constant 0 : i32
    %c0_i32_0 = arith.constant 0 : i32
    %c0_i32_1 = arith.constant 0 : i32
    return %c0_i32, %c0_i32_0 : i32, i32
  }
  func.func @transform_5(%arg0: i32) -> (i32, i32) {
    %c0_i32 = arith.constant 0 : i32
    %c0_i32_0 = arith.constant 0 : i32
    %c0_i32_1 = arith.constant 0 : i32
    return %c0_i32, %c0_i32_0 : i32, i32
  }
  func.func @transform_6(%arg0: i32) -> (i32, i32) {
    %c0_i32 = arith.constant 0 : i32
    %c0_i32_0 = arith.constant 0 : i32
    %c0_i32_1 = arith.constant 0 : i32
    return %c0_i32, %c0_i32_0 : i32, i32
  }
  func.func @transform_7(%arg0: i32) -> (i32, i32) {
    %c0_i32 = arith.constant 0 : i32
    %c0_i32_0 = arith.constant 0 : i32
    %c0_i32_1 = arith.constant 0 : i32
    return %c0_i32, %c0_i32_0 : i32, i32
  }
  func.func @transform_8(%arg0: i32) -> (i32, i32) {
    %c0_i32 = arith.constant 0 : i32
    %c0_i32_0 = arith.constant 0 : i32
    %c0_i32_1 = arith.constant 0 : i32
    return %c0_i32, %c0_i32_0 : i32, i32
  }
  func.func @transform_9(%arg0: i32) -> (i32, i32) {
    %c0_i32 = arith.constant 0 : i32
    %c0_i32_0 = arith.constant 0 : i32
    %c0_i32_1 = arith.constant 0 : i32
    return %c0_i32, %c0_i32_0 : i32, i32
  }
  func.func @transform_10(%arg0: i32) -> (i32, i32) {
    %c0_i32 = arith.constant 0 : i32
    %c0_i32_0 = arith.constant 0 : i32
    %c0_i32_1 = arith.constant 0 : i32
    return %c0_i32, %c0_i32_0 : i32, i32
  }
  func.func @transform_11(%arg0: i32) -> (i32, i32) {
    %c0_i32 = arith.constant 0 : i32
    %c0_i32_0 = arith.constant 0 : i32
    %c0_i32_1 = arith.constant 0 : i32
    return %c0_i32, %c0_i32_0 : i32, i32
  }
  func.func @transform_12(%arg0: i32) -> (i32, i32) {
    %c0_i32 = arith.constant 0 : i32
    %c0_i32_0 = arith.constant 0 : i32
    %c0_i32_1 = arith.constant 0 : i32
    return %c0_i32, %c0_i32_0 : i32, i32
  }
  func.func @transform_13(%arg0: i32) -> (i32, i32) {
    %c0_i32 = arith.constant 0 : i32
    %c0_i32_0 = arith.constant 0 : i32
    %c0_i32_1 = arith.constant 0 : i32
    return %c0_i32, %c0_i32_0 : i32, i32
  }
  func.func @transform_14(%arg0: i32) -> (i32, i32) {
    %c0_i32 = arith.constant 0 : i32
    %c0_i32_0 = arith.constant 0 : i32
    %c0_i32_1 = arith.constant 0 : i32
    return %c0_i32, %c0_i32_0 : i32, i32
  }
  func.func @transform_15(%arg0: i32) -> (i32, i32) {
    %c0_i32 = arith.constant 0 : i32
    %c0_i32_0 = arith.constant 0 : i32
    %c0_i32_1 = arith.constant 0 : i32
    return %c0_i32, %c0_i32_0 : i32, i32
  }
  func.func @transform_16(%arg0: i32) -> (i32, i32) {
    %c0_i32 = arith.constant 0 : i32
    %c0_i32_0 = arith.constant 0 : i32
    return %arg0, %c0_i32 : i32, i32
  }
}

module attributes {stable_mosaic.version = 11 : i64} {
  func.func @actor_kernel(%arg0: i32, %arg1: memref<16x128xf32, #tpu.memory_space<vmem>>, %arg2: memref<16x16xf32, #tpu.memory_space<vmem>>, %arg3: memref<128x32xbf16, #tpu.memory_space<vmem>>, %arg4: memref<1x32xf32, #tpu.memory_space<vmem>>, %arg5: memref<1x32xf32, #tpu.memory_space<vmem>>, %arg6: memref<1x32xf32, #tpu.memory_space<vmem>>, %arg7: memref<48x64xbf16, #tpu.memory_space<vmem>>, %arg8: memref<1x64xf32, #tpu.memory_space<vmem>>, %arg9: memref<1x64xf32, #tpu.memory_space<vmem>>, %arg10: memref<1x64xf32, #tpu.memory_space<vmem>>, %arg11: memref<64x64xbf16, #tpu.memory_space<vmem>>, %arg12: memref<1x64xf32, #tpu.memory_space<vmem>>, %arg13: memref<1x64xf32, #tpu.memory_space<vmem>>, %arg14: memref<1x64xf32, #tpu.memory_space<vmem>>, %arg15: memref<64x8xbf16, #tpu.memory_space<vmem>>, %arg16: memref<1x8xf32, #tpu.memory_space<vmem>>, %arg17: memref<16x8xf32, #tpu.memory_space<vmem>>) attributes {dimension_semantics = [#tpu.dimension_semantics<parallel>], iteration_bounds = array<i64: 1>, scalar_prefetch = 0 : i64, scratch_operands = 0 : i64, tpu.core_type = #tpu.core_type<tc>, window_params = [{transform_indices = @transform_0, window_bounds = array<i64: 16, 128>}, {transform_indices = @transform_1, window_bounds = array<i64: 16, 16>}, {pipeline_mode = #tpu.pipeline_mode<synchronous>, transform_indices = @transform_2, window_bounds = array<i64: 128, 32>}, {pipeline_mode = #tpu.pipeline_mode<synchronous>, transform_indices = @transform_3, window_bounds = array<i64: 1, 32>}, {pipeline_mode = #tpu.pipeline_mode<synchronous>, transform_indices = @transform_4, window_bounds = array<i64: 1, 32>}, {pipeline_mode = #tpu.pipeline_mode<synchronous>, transform_indices = @transform_5, window_bounds = array<i64: 1, 32>}, {pipeline_mode = #tpu.pipeline_mode<synchronous>, transform_indices = @transform_6, window_bounds = array<i64: 48, 64>}, {pipeline_mode = #tpu.pipeline_mode<synchronous>, transform_indices = @transform_7, window_bounds = array<i64: 1, 64>}, {pipeline_mode = #tpu.pipeline_mode<synchronous>, transform_indices = @transform_8, window_bounds = array<i64: 1, 64>}, {pipeline_mode = #tpu.pipeline_mode<synchronous>, transform_indices = @transform_9, window_bounds = array<i64: 1, 64>}, {pipeline_mode = #tpu.pipeline_mode<synchronous>, transform_indices = @transform_10, window_bounds = array<i64: 64, 64>}, {pipeline_mode = #tpu.pipeline_mode<synchronous>, transform_indices = @transform_11, window_bounds = array<i64: 1, 64>}, {pipeline_mode = #tpu.pipeline_mode<synchronous>, transform_indices = @transform_12, window_bounds = array<i64: 1, 64>}, {pipeline_mode = #tpu.pipeline_mode<synchronous>, transform_indices = @transform_13, window_bounds = array<i64: 1, 64>}, {pipeline_mode = #tpu.pipeline_mode<synchronous>, transform_indices = @transform_14, window_bounds = array<i64: 64, 8>}, {pipeline_mode = #tpu.pipeline_mode<synchronous>, transform_indices = @transform_15, window_bounds = array<i64: 1, 8>}, {transform_indices = @transform_16, window_bounds = array<i64: 16, 8>}]} {
    %c0 = arith.constant 0 : index
    %c0_0 = arith.constant 0 : index
    %0 = vector.load %arg1[%c0, %c0_0] : memref<16x128xf32, #tpu.memory_space<vmem>>, vector<16x128xf32>
    %1 = arith.truncf %0 : vector<16x128xf32> to vector<16x128xbf16>
    %c0_1 = arith.constant 0 : index
    %c0_2 = arith.constant 0 : index
    %2 = vector.load %arg2[%c0_1, %c0_2] : memref<16x16xf32, #tpu.memory_space<vmem>>, vector<16x16xf32>
    %c0_3 = arith.constant 0 : index
    %c0_4 = arith.constant 0 : index
    %3 = vector.load %arg3[%c0_3, %c0_4] : memref<128x32xbf16, #tpu.memory_space<vmem>>, vector<128x32xbf16>
    %cst = arith.constant dense<0.000000e+00> : vector<16x32xf32>
    %4 = tpu.matmul %1, %3, %cst {dimension_numbers = #tpu.dot_dimension_numbers<[1], [0], [0], [1], [0, 0, 1, 1], [], []>} : vector<16x128xbf16>, vector<128x32xbf16>, vector<16x32xf32> -> vector<16x32xf32>
    %c0_5 = arith.constant 0 : index
    %c0_6 = arith.constant 0 : index
    %5 = vector.load %arg4[%c0_5, %c0_6] : memref<1x32xf32, #tpu.memory_space<vmem>>, vector<1x32xf32>
    %6 = vector.broadcast %5 : vector<1x32xf32> to vector<16x32xf32>
    %7 = arith.addf %4, %6 : vector<16x32xf32>
    %c0_7 = arith.constant 0 : index
    %c0_8 = arith.constant 0 : index
    %8 = vector.load %arg5[%c0_7, %c0_8] : memref<1x32xf32, #tpu.memory_space<vmem>>, vector<1x32xf32>
    %c0_9 = arith.constant 0 : index
    %c0_10 = arith.constant 0 : index
    %9 = vector.load %arg6[%c0_9, %c0_10] : memref<1x32xf32, #tpu.memory_space<vmem>>, vector<1x32xf32>
    %cst_11 = arith.constant dense<0.000000e+00> : vector<16xf32>
    %10 = vector.multi_reduction <add>, %7, %cst_11 [1] : vector<16x32xf32> to vector<16xf32>
    %11 = vector.shape_cast %10 : vector<16xf32> to vector<16x1xf32>
    %cst_12 = arith.constant 3.200000e+01 : f32
    %12 = vector.broadcast %cst_12 : f32 to vector<16x1xf32>
    %13 = arith.divf %11, %12 : vector<16x1xf32>
    %14 = vector.broadcast %13 : vector<16x1xf32> to vector<16x32xf32>
    %15 = arith.subf %7, %14 : vector<16x32xf32>
    %16 = arith.mulf %15, %15 : vector<16x32xf32>
    %cst_13 = arith.constant dense<0.000000e+00> : vector<16xf32>
    %17 = vector.multi_reduction <add>, %16, %cst_13 [1] : vector<16x32xf32> to vector<16xf32>
    %18 = vector.shape_cast %17 : vector<16xf32> to vector<16x1xf32>
    %cst_14 = arith.constant 3.200000e+01 : f32
    %19 = vector.broadcast %cst_14 : f32 to vector<16x1xf32>
    %20 = arith.divf %18, %19 : vector<16x1xf32>
    %cst_15 = arith.constant 9.99999974E-6 : f32
    %21 = vector.broadcast %cst_15 : f32 to vector<16x1xf32>
    %22 = arith.addf %20, %21 : vector<16x1xf32>
    %23 = math.rsqrt %22 : vector<16x1xf32>
    %24 = vector.broadcast %23 : vector<16x1xf32> to vector<16x32xf32>
    %25 = arith.mulf %15, %24 : vector<16x32xf32>
    %26 = vector.broadcast %8 : vector<1x32xf32> to vector<16x32xf32>
    %27 = arith.mulf %25, %26 : vector<16x32xf32>
    %28 = vector.broadcast %9 : vector<1x32xf32> to vector<16x32xf32>
    %29 = arith.addf %27, %28 : vector<16x32xf32>
    %cst_16 = arith.constant 0.000000e+00 : f32
    %30 = vector.broadcast %cst_16 : f32 to vector<16x32xf32>
    %31 = arith.maximumf %29, %30 : vector<16x32xf32>
    %32 = arith.truncf %31 : vector<16x32xf32> to vector<16x32xbf16>
    %33 = arith.truncf %2 : vector<16x16xf32> to vector<16x16xbf16>
    %34 = tpu.concatenate %32, %33 in 1 : vector<16x32xbf16>, vector<16x16xbf16> -> vector<16x48xbf16>
    %c0_17 = arith.constant 0 : index
    %c0_18 = arith.constant 0 : index
    %35 = vector.load %arg7[%c0_17, %c0_18] : memref<48x64xbf16, #tpu.memory_space<vmem>>, vector<48x64xbf16>
    %cst_19 = arith.constant dense<0.000000e+00> : vector<16x64xf32>
    %36 = tpu.matmul %34, %35, %cst_19 {dimension_numbers = #tpu.dot_dimension_numbers<[1], [0], [0], [1], [0, 0, 1, 1], [], []>} : vector<16x48xbf16>, vector<48x64xbf16>, vector<16x64xf32> -> vector<16x64xf32>
    %c0_20 = arith.constant 0 : index
    %c0_21 = arith.constant 0 : index
    %37 = vector.load %arg8[%c0_20, %c0_21] : memref<1x64xf32, #tpu.memory_space<vmem>>, vector<1x64xf32>
    %38 = vector.broadcast %37 : vector<1x64xf32> to vector<16x64xf32>
    %39 = arith.addf %36, %38 : vector<16x64xf32>
    %c0_22 = arith.constant 0 : index
    %c0_23 = arith.constant 0 : index
    %40 = vector.load %arg9[%c0_22, %c0_23] : memref<1x64xf32, #tpu.memory_space<vmem>>, vector<1x64xf32>
    %c0_24 = arith.constant 0 : index
    %c0_25 = arith.constant 0 : index
    %41 = vector.load %arg10[%c0_24, %c0_25] : memref<1x64xf32, #tpu.memory_space<vmem>>, vector<1x64xf32>
    %cst_26 = arith.constant dense<0.000000e+00> : vector<16xf32>
    %42 = vector.multi_reduction <add>, %39, %cst_26 [1] : vector<16x64xf32> to vector<16xf32>
    %43 = vector.shape_cast %42 : vector<16xf32> to vector<16x1xf32>
    %cst_27 = arith.constant 6.400000e+01 : f32
    %44 = vector.broadcast %cst_27 : f32 to vector<16x1xf32>
    %45 = arith.divf %43, %44 : vector<16x1xf32>
    %46 = vector.broadcast %45 : vector<16x1xf32> to vector<16x64xf32>
    %47 = arith.subf %39, %46 : vector<16x64xf32>
    %48 = arith.mulf %47, %47 : vector<16x64xf32>
    %cst_28 = arith.constant dense<0.000000e+00> : vector<16xf32>
    %49 = vector.multi_reduction <add>, %48, %cst_28 [1] : vector<16x64xf32> to vector<16xf32>
    %50 = vector.shape_cast %49 : vector<16xf32> to vector<16x1xf32>
    %cst_29 = arith.constant 6.400000e+01 : f32
    %51 = vector.broadcast %cst_29 : f32 to vector<16x1xf32>
    %52 = arith.divf %50, %51 : vector<16x1xf32>
    %cst_30 = arith.constant 9.99999974E-6 : f32
    %53 = vector.broadcast %cst_30 : f32 to vector<16x1xf32>
    %54 = arith.addf %52, %53 : vector<16x1xf32>
    %55 = math.rsqrt %54 : vector<16x1xf32>
    %56 = vector.broadcast %55 : vector<16x1xf32> to vector<16x64xf32>
    %57 = arith.mulf %47, %56 : vector<16x64xf32>
    %58 = vector.broadcast %40 : vector<1x64xf32> to vector<16x64xf32>
    %59 = arith.mulf %57, %58 : vector<16x64xf32>
    %60 = vector.broadcast %41 : vector<1x64xf32> to vector<16x64xf32>
    %61 = arith.addf %59, %60 : vector<16x64xf32>
    %cst_31 = arith.constant 0.000000e+00 : f32
    %62 = vector.broadcast %cst_31 : f32 to vector<16x64xf32>
    %63 = arith.maximumf %61, %62 : vector<16x64xf32>
    %64 = arith.truncf %63 : vector<16x64xf32> to vector<16x64xbf16>
    %c0_32 = arith.constant 0 : index
    %c0_33 = arith.constant 0 : index
    %65 = vector.load %arg11[%c0_32, %c0_33] : memref<64x64xbf16, #tpu.memory_space<vmem>>, vector<64x64xbf16>
    %cst_34 = arith.constant dense<0.000000e+00> : vector<16x64xf32>
    %66 = tpu.matmul %64, %65, %cst_34 {dimension_numbers = #tpu.dot_dimension_numbers<[1], [0], [0], [1], [0, 0, 1, 1], [], []>} : vector<16x64xbf16>, vector<64x64xbf16>, vector<16x64xf32> -> vector<16x64xf32>
    %c0_35 = arith.constant 0 : index
    %c0_36 = arith.constant 0 : index
    %67 = vector.load %arg12[%c0_35, %c0_36] : memref<1x64xf32, #tpu.memory_space<vmem>>, vector<1x64xf32>
    %68 = vector.broadcast %67 : vector<1x64xf32> to vector<16x64xf32>
    %69 = arith.addf %66, %68 : vector<16x64xf32>
    %c0_37 = arith.constant 0 : index
    %c0_38 = arith.constant 0 : index
    %70 = vector.load %arg13[%c0_37, %c0_38] : memref<1x64xf32, #tpu.memory_space<vmem>>, vector<1x64xf32>
    %c0_39 = arith.constant 0 : index
    %c0_40 = arith.constant 0 : index
    %71 = vector.load %arg14[%c0_39, %c0_40] : memref<1x64xf32, #tpu.memory_space<vmem>>, vector<1x64xf32>
    %cst_41 = arith.constant dense<0.000000e+00> : vector<16xf32>
    %72 = vector.multi_reduction <add>, %69, %cst_41 [1] : vector<16x64xf32> to vector<16xf32>
    %73 = vector.shape_cast %72 : vector<16xf32> to vector<16x1xf32>
    %cst_42 = arith.constant 6.400000e+01 : f32
    %74 = vector.broadcast %cst_42 : f32 to vector<16x1xf32>
    %75 = arith.divf %73, %74 : vector<16x1xf32>
    %76 = vector.broadcast %75 : vector<16x1xf32> to vector<16x64xf32>
    %77 = arith.subf %69, %76 : vector<16x64xf32>
    %78 = arith.mulf %77, %77 : vector<16x64xf32>
    %cst_43 = arith.constant dense<0.000000e+00> : vector<16xf32>
    %79 = vector.multi_reduction <add>, %78, %cst_43 [1] : vector<16x64xf32> to vector<16xf32>
    %80 = vector.shape_cast %79 : vector<16xf32> to vector<16x1xf32>
    %cst_44 = arith.constant 6.400000e+01 : f32
    %81 = vector.broadcast %cst_44 : f32 to vector<16x1xf32>
    %82 = arith.divf %80, %81 : vector<16x1xf32>
    %cst_45 = arith.constant 9.99999974E-6 : f32
    %83 = vector.broadcast %cst_45 : f32 to vector<16x1xf32>
    %84 = arith.addf %82, %83 : vector<16x1xf32>
    %85 = math.rsqrt %84 : vector<16x1xf32>
    %86 = vector.broadcast %85 : vector<16x1xf32> to vector<16x64xf32>
    %87 = arith.mulf %77, %86 : vector<16x64xf32>
    %88 = vector.broadcast %70 : vector<1x64xf32> to vector<16x64xf32>
    %89 = arith.mulf %87, %88 : vector<16x64xf32>
    %90 = vector.broadcast %71 : vector<1x64xf32> to vector<16x64xf32>
    %91 = arith.addf %89, %90 : vector<16x64xf32>
    %cst_46 = arith.constant 0.000000e+00 : f32
    %92 = vector.broadcast %cst_46 : f32 to vector<16x64xf32>
    %93 = arith.maximumf %91, %92 : vector<16x64xf32>
    %94 = arith.truncf %93 : vector<16x64xf32> to vector<16x64xbf16>
    %c0_47 = arith.constant 0 : index
    %c0_48 = arith.constant 0 : index
    %95 = vector.load %arg15[%c0_47, %c0_48] : memref<64x8xbf16, #tpu.memory_space<vmem>>, vector<64x8xbf16>
    %cst_49 = arith.constant dense<0.000000e+00> : vector<16x8xf32>
    %96 = tpu.matmul %94, %95, %cst_49 {dimension_numbers = #tpu.dot_dimension_numbers<[1], [0], [0], [1], [0, 0, 1, 1], [], []>} : vector<16x64xbf16>, vector<64x8xbf16>, vector<16x8xf32> -> vector<16x8xf32>
    %c0_50 = arith.constant 0 : index
    %c0_51 = arith.constant 0 : index
    %97 = vector.load %arg16[%c0_50, %c0_51] : memref<1x8xf32, #tpu.memory_space<vmem>>, vector<1x8xf32>
    %98 = vector.broadcast %97 : vector<1x8xf32> to vector<16x8xf32>
    %99 = arith.addf %96, %98 : vector<16x8xf32>
    %100 = math.tanh %99 : vector<16x8xf32>
    %c0_52 = arith.constant 0 : index
    %c0_53 = arith.constant 0 : index
    %101 = vector.load %arg17[%c0_52, %c0_53] : memref<16x8xf32, #tpu.memory_space<vmem>>, vector<16x8xf32>
    tpu.vector_store %arg17[%c0_52, %c0_53], %100 {strides = array<i32>} : memref<16x8xf32, #tpu.memory_space<vmem>>, vector<16x8xf32>,
    return
  }
  func.func @transform_0(%arg0: i32) -> (i32, i32) {
    %c0_i32 = arith.constant 0 : i32
    %c0_i32_0 = arith.constant 0 : i32
    return %arg0, %c0_i32 : i32, i32
  }
  func.func @transform_1(%arg0: i32) -> (i32, i32) {
    %c0_i32 = arith.constant 0 : i32
    %c0_i32_0 = arith.constant 0 : i32
    return %arg0, %c0_i32 : i32, i32
  }
  func.func @transform_2(%arg0: i32) -> (i32, i32) {
    %c0_i32 = arith.constant 0 : i32
    %c0_i32_0 = arith.constant 0 : i32
    %c0_i32_1 = arith.constant 0 : i32
    return %c0_i32, %c0_i32_0 : i32, i32
  }
  func.func @transform_3(%arg0: i32) -> (i32, i32) {
    %c0_i32 = arith.constant 0 : i32
    %c0_i32_0 = arith.constant 0 : i32
    %c0_i32_1 = arith.constant 0 : i32
    return %c0_i32, %c0_i32_0 : i32, i32
  }
  func.func @transform_4(%arg0: i32) -> (i32, i32) {
    %c0_i32 = arith.constant 0 : i32
    %c0_i32_0 = arith.constant 0 : i32
    %c0_i32_1 = arith.constant 0 : i32
    return %c0_i32, %c0_i32_0 : i32, i32
  }
  func.func @transform_5(%arg0: i32) -> (i32, i32) {
    %c0_i32 = arith.constant 0 : i32
    %c0_i32_0 = arith.constant 0 : i32
    %c0_i32_1 = arith.constant 0 : i32
    return %c0_i32, %c0_i32_0 : i32, i32
  }
  func.func @transform_6(%arg0: i32) -> (i32, i32) {
    %c0_i32 = arith.constant 0 : i32
    %c0_i32_0 = arith.constant 0 : i32
    %c0_i32_1 = arith.constant 0 : i32
    return %c0_i32, %c0_i32_0 : i32, i32
  }
  func.func @transform_7(%arg0: i32) -> (i32, i32) {
    %c0_i32 = arith.constant 0 : i32
    %c0_i32_0 = arith.constant 0 : i32
    %c0_i32_1 = arith.constant 0 : i32
    return %c0_i32, %c0_i32_0 : i32, i32
  }
  func.func @transform_8(%arg0: i32) -> (i32, i32) {
    %c0_i32 = arith.constant 0 : i32
    %c0_i32_0 = arith.constant 0 : i32
    %c0_i32_1 = arith.constant 0 : i32
    return %c0_i32, %c0_i32_0 : i32, i32
  }
  func.func @transform_9(%arg0: i32) -> (i32, i32) {
    %c0_i32 = arith.constant 0 : i32
    %c0_i32_0 = arith.constant 0 : i32
    %c0_i32_1 = arith.constant 0 : i32
    return %c0_i32, %c0_i32_0 : i32, i32
  }
  func.func @transform_10(%arg0: i32) -> (i32, i32) {
    %c0_i32 = arith.constant 0 : i32
    %c0_i32_0 = arith.constant 0 : i32
    %c0_i32_1 = arith.constant 0 : i32
    return %c0_i32, %c0_i32_0 : i32, i32
  }
  func.func @transform_11(%arg0: i32) -> (i32, i32) {
    %c0_i32 = arith.constant 0 : i32
    %c0_i32_0 = arith.constant 0 : i32
    %c0_i32_1 = arith.constant 0 : i32
    return %c0_i32, %c0_i32_0 : i32, i32
  }
  func.func @transform_12(%arg0: i32) -> (i32, i32) {
    %c0_i32 = arith.constant 0 : i32
    %c0_i32_0 = arith.constant 0 : i32
    %c0_i32_1 = arith.constant 0 : i32
    return %c0_i32, %c0_i32_0 : i32, i32
  }
  func.func @transform_13(%arg0: i32) -> (i32, i32) {
    %c0_i32 = arith.constant 0 : i32
    %c0_i32_0 = arith.constant 0 : i32
    %c0_i32_1 = arith.constant 0 : i32
    return %c0_i32, %c0_i32_0 : i32, i32
  }
  func.func @transform_14(%arg0: i32) -> (i32, i32) {
    %c0_i32 = arith.constant 0 : i32
    %c0_i32_0 = arith.constant 0 : i32
    %c0_i32_1 = arith.constant 0 : i32
    return %c0_i32, %c0_i32_0 : i32, i32
  }
  func.func @transform_15(%arg0: i32) -> (i32, i32) {
    %c0_i32 = arith.constant 0 : i32
    %c0_i32_0 = arith.constant 0 : i32
    %c0_i32_1 = arith.constant 0 : i32
    return %c0_i32, %c0_i32_0 : i32, i32
  }
  func.func @transform_16(%arg0: i32) -> (i32, i32) {
    %c0_i32 = arith.constant 0 : i32
    %c0_i32_0 = arith.constant 0 : i32
    return %arg0, %c0_i32 : i32, i32
  }
}

</mosaic_0001>

<bundles_post_ra>
// kernel: tpu_custom_call.1
= control target key start
LH: loop header
LB: loop body
LE: loop exit
PB: predicated region body
PF: predicated region fallthrough
CT: control target
= control target key end

     0   :  { %s1004_s0 = inlined_call_operand.vmem [shape: f32[8,128], index: 0, kind: input, shape index: {}]   ;;  %s1005_s1 = inlined_call_operand.vmem [shape: f32[8,16], index: 1, kind: input, shape index: {}]   ;;  %s1006_s2 = inlined_call_operand.vmem [shape: bf16[128,32], index: 2, kind: input, shape index: {}]   ;;  %s1007_s3 = inlined_call_operand.vmem [shape: f32[1,32], index: 3, kind: input, shape index: {}]   ;;  %s1008_s4 = inlined_call_operand.vmem [shape: f32[1,32], index: 4, kind: input, shape index: {}]   ;;  %s1009_s5 = inlined_call_operand.vmem [shape: f32[1,32], index: 5, kind: input, shape index: {}]   ;;  %s1010_s6 = inlined_call_operand.vmem [shape: bf16[48,64], index: 6, kind: input, shape index: {}]   ;;  %s1011_s7 = inlined_call_operand.vmem [shape: f32[1,64], index: 7, kind: input, shape index: {}]   ;;  %s1012_s8 = inlined_call_operand.vmem [shape: f32[1,64], index: 8, kind: input, shape index: {}]   ;;  %s1013_s9 = inlined_call_operand.vmem [shape: f32[1,64], index: 9, kind: input, shape index: {}]   ;;  %s1014_s10 = inlined_call_operand.vmem [shape: bf16[64,64], index: 10, kind: input, shape index: {}]   ;;  %s1015_s11 = inlined_call_operand.vmem [shape: f32[1,64], index: 11, kind: input, shape index: {}]   ;;  %s1016_s12 = inlined_call_operand.vmem [shape: f32[1,64], index: 12, kind: input, shape index: {}]   ;;  %s1017_s13 = inlined_call_operand.vmem [shape: f32[1,64], index: 13, kind: input, shape index: {}]   ;;  %s1018_s14 = inlined_call_operand.vmem [shape: bf16[64,8], index: 14, kind: input, shape index: {}]   ;;  %s1019_s15 = inlined_call_operand.vmem [shape: f32[1,8], index: 15, kind: input, shape index: {}]   ;;  %s1020_s16 = inlined_call_operand.hbm [shape: f32[8,8], index: 16, kind: output, shape index: {}]  }
   0x1   :  { %1022 = sst [smem:[#allocation5_spill]] %s1004_s0 }
   0x2   :  { %21 = vsyncpa [#allocation3], 0  ;;  %v701_v0 = vld [vmem:[%s1006_s2] sm:$0xff]   ;;  %v760_v1 = vmov 0.0   ;;  %v702_v2 = vld [vmem:[%s1006_s2 + $0x8] sm:$0xff]   ;;  %vm761_vm0 = vmmov 0  }
   0x3   :  { %641 = vmatprep.subr.bf16.mxu0 %v760_v1  ;;  %661 = vmatprep.subr.bf16.mxu1 %v760_v1  ;;  %v703_v3 = vld [vmem:[%s1006_s2 + $0x10] sm:$0xff]   ;;  %v704_v4 = vld [vmem:[%s1006_s2 + $0x18] sm:$0xff]   ;;  %v705_v5 = vld [vmem:[%s1006_s2 + $0x20] sm:$0xff]   ;;  %s1023_s24 = sld [smem:[#allocation5_spill]]  ;;  %vm174_vm1 = vcmask 261120   ;;  %vm259_vm2 = vcmask 392192  }
   0x4   :  { %642 = vmatpush3.bf16.msra.mxu0 %v701_v0  ;;  %657 = vmatprep.mubr.msk.bf16.mxu0 %vm761_vm0, %v760_v1  ;;  %v706_v6 = vld [vmem:[%s1006_s2 + $0x28] sm:$0xff]   ;;  %v707_v7 = vld [vmem:[%s1006_s2 + $0x30] sm:$0xff]   ;;  %v708_v8 = vld [vmem:[%s1006_s2 + $0x38] sm:$0xff]   ;;  %vm305_vm3 = vcmask 523264   ;;  %vm567_vm4 = vcmask 64512  }
   0x5   :  { %643 = vmatprep.subr.bf16.mxu0 %v760_v1  ;;  %667 = vmatprep.mubr.msk.bf16.mxu1 %vm761_vm0, %v760_v1  ;;  %v586_v12 = vld [vmem:[%s1007_s3] ss:$0 sm:$0xff]  ;;  %v59_v22 = vld [vmem:[%s1005_s1 + $0x8] sm:$0xff]  ;;  %s762_s3 = smov 32   ;;  %v711_v36 = vld [vmem:[%s1010_s6 + $0x10] sm:$0xff]  }
   0x6   :  { %v58_v21 = vld [vmem:[%s1005_s1] sm:$0xff]  ;;  %v710_v35 = vld [vmem:[%s1010_s6 + $0x8] sm:$0xff]  }
   0x7   :  { %v221_v23 = vpack.c.bf16 %v59_v22, %v58_v21  ;;  %v709_v34 = vld [vmem:[%s1010_s6] sm:$0xff]  }
   0x8   :  { %644 = vmatpush3.bf16.msra.mxu0 %v702_v2  ;;  %662 = vmatpush3.bf16.msra.mxu1 %v709_v34  ;;  %v595_v44 = vld [vmem:[%s1008_s4] ss:$0 sm:$0xff] }
   0x9   :  { %645 = vmatprep.subr.bf16.mxu0 %v760_v1  ;;  %v55_v9 = vld [vmem:[%s1023_s24] sm:$0xff]  ;;  %v56_v10 = vld [vmem:[%s1023_s24 + $0x8] sm:$0xff]  ;;  %663 = vmatprep.subr.bf16.mxu1 %v760_v1 }
   0xa   :  { %v57_v11 = vpack.c.bf16 %v56_v10, %v55_v9  ;;  %v596_v48 = vld [vmem:[%s1009_s5] ss:$0 sm:$0xff] }
   0xb   :  { %v597_v58 = vld [vmem:[%s1011_s7] ss:$0 sm:$0xff] }
   0xc   :  { %646 = vmatpush3.bf16.msra.mxu0 %v703_v3  ;;  %664 = vmatpush3.bf16.msra.mxu1 %v710_v35 }
   0xd   :  { %647 = vmatprep.subr.bf16.mxu0 %v760_v1  ;;  %665 = vmatprep.subr.bf16.mxu1 %v760_v1 }
  0x10   :  { %648 = vmatpush3.bf16.msra.mxu0 %v704_v4  ;;  %666 = vmatpush3.bf16.msra.mxu1 %v711_v36 }
  0x11   :  { %649 = vmatprep.subr.bf16.mxu0 %v760_v1  ;;  %671 = vmatprep.subr.bf16.mxu1 %v760_v1 }
  0x14   :  { %650 = vmatpush3.bf16.msra.mxu0 %v705_v5 }
  0x15   :  { %651 = vmatprep.subr.bf16.mxu0 %v760_v1 }
  0x18   :  { %652 = vmatpush3.bf16.msra.mxu0 %v706_v6 }
  0x19   :  { %653 = vmatprep.subr.bf16.mxu0 %v760_v1 }
  0x1c   :  { %654 = vmatpush3.bf16.msra.mxu0 %v707_v7 }
  0x1d   :  { %655 = vmatprep.subr.bf16.mxu0 %v760_v1 }
  0x20   :  { %656 = vmatpush3.bf16.msra.mxu0 %v708_v8 }
  0x23   :  { %658 = vmatmul.mubr.bf16.vlgmr.msra.gmra.mrb[0].mxu0 %v57_v11 }
  0xf6   :  { %v165_v13 = vpop.f32.mrb[0].mxu0 }
  0xf7   :  { %v166_v14 = vadd.f32 %v586_v12, %v165_v13  ;;  %v659_v15 = vpop.f32.mrb[1].mxu0 }
  0xf8   :  { %v168_v16 = vpop.f32.mrb[2].mxu0  ;;  %v713_v15 = vld [vmem:[%s1014_s10 + $0x8] sm:$0xff]  }
  0xf9   :  { %v169_v17 = vadd.f32 %v586_v12, %v168_v16  ;;  %v660_v18 = vpop.f32.mrb[3].mxu0  ;;  %v175_v19 = vsel %vm174_vm1, %v166_v14, 0.0  ;;  %v714_v16 = vld [vmem:[%s1014_s10 + $0x10] sm:$0xff]  }
  0xfa   :  { %176 = vadd.xlane.f32.xlu0 %v175_v19 }
  0xfb   :  { %v178_v20 = vsel %vm174_vm1, %v169_v17, 0.0 }
  0xfe   :  { %179 = vadd.xlane.f32.xlu0 %v178_v20 }
 0x114   :  { %223 = vrot.lane.b32.xlu0 %v221_v23, %s762_s3 }
 0x187   :  { %v177_v24 = vpop.xlane.xlu0 %176 }
 0x188   :  { %v182_v25 = vmul.f32 0.03125, %v177_v24 }
 0x18a   :  { %v184_v26 = vsub.f32 %v166_v14, %v182_v25  ;;  %v712_v14 = vld [vmem:[%s1014_s10] sm:$0xff]  }
 0x18b   :  { %v180_v27 = vpop.xlane.xlu0 %179  ;;  %v602_v25 = vld [vmem:[%s1012_s8] ss:$0 sm:$0xff] }
 0x18c   :  { %v183_v28 = vmul.f32 0.03125, %v180_v27  ;;  %v186_v29 = vmul.f32 %v184_v26, %v184_v26 }
 0x18e   :  { %v185_v30 = vsub.f32 %v169_v17, %v183_v28  ;;  %v188_v31 = vsel %vm174_vm1, %v186_v29, 0.0  ;;  %v715_v17 = vld [vmem:[%s1014_s10 + $0x18] sm:$0xff]   ;;  %v603_v29 = vld [vmem:[%s1013_s9] ss:$0 sm:$0xff] }
 0x18f   :  { %189 = vadd.xlane.f32.xlu1 %v188_v31  ;;  %v224_v55 = vpop.permute.xlu0 %223 }
 0x190   :  { %v187_v32 = vmul.f32 %v185_v30, %v185_v30 }
 0x192   :  { %v191_v33 = vsel %vm174_vm1, %v187_v32, 0.0 }
 0x193   :  { %192 = vadd.xlane.f32.xlu1 %v191_v33 }
 0x21c   :  { %v190_v37 = vpop.xlane.xlu1 %189 }
 0x21d   :  { %v194_v38 = vmul.f32 0.03125, %v190_v37  ;;  %v604_v37 = vld [vmem:[%s1015_s11] ss:$0 sm:$0xff] }
 0x21f   :  { %v196_v39 = vadd.f32 1e-05, %v194_v38 }
 0x220   :  { %v193_v40 = vpop.xlane.xlu1 %192 }
 0x221   :  { %720 = vrsqrt.f32 %v196_v39  ;;  %v195_v41 = vmul.f32 0.03125, %v193_v40 }
 0x223   :  { %v197_v42 = vadd.f32 1e-05, %v195_v41 }
 0x225   :  { %722 = vrsqrt.f32 %v197_v42 }
 0x22b   :  { %v721_v43 = vpop.eup %720 }
 0x22c   :  { %v200_v45 = vmul.f32 %v721_v43, %v184_v26 }
 0x22e   :  { %v208_v46 = vmul.f32 %v595_v44, %v200_v45 }
 0x22f   :  { %v723_v47 = vpop.eup %722 }
 0x230   :  { %v201_v49 = vmul.f32 %v723_v47, %v185_v30  ;;  %v216_v51 = vadd.f32 %v596_v48, %v208_v46 }
 0x232   :  { %v209_v50 = vmul.f32 %v595_v44, %v201_v49  ;;  %v218_v53 = vmax.f32 %v216_v51, 0.0 }
 0x234   :  { %v217_v52 = vadd.f32 %v596_v48, %v209_v50 }
 0x236   :  { %v219_v54 = vmax.f32 %v217_v52, 0.0 }
 0x238   :  { %v220_v56 = vpack.c.bf16 %v219_v54, %v218_v53 }
 0x23a   :  { %v227_v57 = vsel %vm174_vm1, %v220_v56, %v224_v55  ;;  %v716_v56 = vld [vmem:[%s1018_s14] sm:$0xff]  }
 0x23b   :  { %668 = vmatmul.mubr.msk.bf16.vlgmr.msra.gmra.mrb[0].mxu1 %vm259_vm2, %v227_v57  ;;  %v717_v57 = vld [vmem:[%s1018_s14 + $0x8] sm:$0xff]  }
 0x23c   :  { %679 = vmatprep.mubr.msk.bf16.mxu1 %vm761_vm0, %v760_v1  ;;  %672 = vmatpush3.bf16.msra.mxu1 %v712_v14 }
 0x23d   :  { %673 = vmatprep.subr.bf16.mxu1 %v760_v1 }
 0x240   :  { %674 = vmatpush3.bf16.msra.mxu1 %v713_v15  ;;  %v612_v15 = vld [vmem:[%s1019_s15] ss:$0 sm:$0xff] }
 0x241   :  { %675 = vmatprep.subr.bf16.mxu1 %v760_v1 }
 0x244   :  { %676 = vmatpush3.bf16.msra.mxu1 %v714_v16 }
 0x245   :  { %677 = vmatprep.subr.bf16.mxu1 %v760_v1 }
 0x248   :  { %678 = vmatpush3.bf16.msra.mxu1 %v715_v17 }
 0x249   :  { %683 = vmatprep.subr.bf16.mxu1 %v760_v1 }
 0x30e   :  { %v296_v59 = vpop.f32.mrb[0].mxu1 }
 0x30f   :  { %v297_v60 = vadd.f32 %v597_v58, %v296_v59  ;;  %v669_v61 = vpop.f32.mrb[1].mxu1  ;;  %v719_v59 = vld [vmem:[%s1018_s14 + $0x18] sm:$0xff]  }
 0x310   :  { %v299_v62 = vpop.f32.mrb[2].mxu1 }
 0x311   :  { %v300_v63 = vadd.f32 %v597_v58, %v299_v62  ;;  %v670_v0 = vpop.f32.mrb[3].mxu1  ;;  %v306_v2 = vsel %vm305_vm3, %v297_v60, 0.0  ;;  %v718_v58 = vld [vmem:[%s1018_s14 + $0x10] sm:$0xff]  }
 0x312   :  { %307 = vadd.xlane.f32.xlu1 %v306_v2 }
 0x313   :  { %v309_v3 = vsel %vm305_vm3, %v300_v63, 0.0 }
 0x316   :  { %310 = vadd.xlane.f32.xlu1 %v309_v3 }
 0x39f   :  { %v308_v4 = vpop.xlane.xlu1 %307 }
 0x3a0   :  { %v313_v5 = vmul.f32 0.015625, %v308_v4  ;;  %v610_v4 = vld [vmem:[%s1016_s12] ss:$0 sm:$0xff] }
 0x3a2   :  { %v315_v6 = vsub.f32 %v297_v60, %v313_v5 }
 0x3a3   :  { %v311_v7 = vpop.xlane.xlu1 %310 }
 0x3a4   :  { %v314_v8 = vmul.f32 0.015625, %v311_v7  ;;  %v317_v9 = vmul.f32 %v315_v6, %v315_v6 }
 0x3a6   :  { %v316_v10 = vsub.f32 %v300_v63, %v314_v8  ;;  %v319_v11 = vsel %vm305_vm3, %v317_v9, 0.0 }
 0x3a7   :  { %320 = vadd.xlane.f32.xlu1 %v319_v11 }
 0x3a8   :  { %v318_v12 = vmul.f32 %v316_v10, %v316_v10 }
 0x3aa   :  { %v322_v13 = vsel %vm305_vm3, %v318_v12, 0.0 }
 0x3ab   :  { %323 = vadd.xlane.f32.xlu1 %v322_v13 }
 0x434   :  { %v321_v18 = vpop.xlane.xlu1 %320 }
 0x435   :  { %v325_v19 = vmul.f32 0.015625, %v321_v18 }
 0x437   :  { %v327_v20 = vadd.f32 1e-05, %v325_v19 }
 0x438   :  { %v324_v21 = vpop.xlane.xlu1 %323 }
 0x439   :  { %724 = vrsqrt.f32 %v327_v20  ;;  %v326_v22 = vmul.f32 0.015625, %v324_v21 }
 0x43b   :  { %v328_v23 = vadd.f32 1e-05, %v326_v22 }
 0x43d   :  { %726 = vrsqrt.f32 %v328_v23 }
 0x443   :  { %v725_v24 = vpop.eup %724 }
 0x444   :  { %v331_v26 = vmul.f32 %v725_v24, %v315_v6 }
 0x446   :  { %v339_v27 = vmul.f32 %v602_v25, %v331_v26 }
 0x447   :  { %v727_v28 = vpop.eup %726 }
 0x448   :  { %v332_v30 = vmul.f32 %v727_v28, %v316_v10  ;;  %v347_v32 = vadd.f32 %v603_v29, %v339_v27 }
 0x44a   :  { %v340_v31 = vmul.f32 %v602_v25, %v332_v30  ;;  %v349_v34 = vmax.f32 %v347_v32, 0.0 }
 0x44c   :  { %v348_v33 = vadd.f32 %v603_v29, %v340_v31 }
 0x44e   :  { %v350_v35 = vmax.f32 %v348_v33, 0.0 }
 0x450   :  { %v351_v36 = vpack.c.bf16 %v350_v35, %v349_v34 }
 0x452   :  { %680 = vmatmul.mubr.msk.bf16.vlgmr.msra.gmra.mrb[4].mxu1 %vm305_vm3, %v351_v36 }
 0x453   :  { %691 = vmatprep.mubr.msk.bf16.mxu1 %vm761_vm0, %v760_v1  ;;  %684 = vmatpush3.bf16.msra.mxu1 %v716_v56 }
 0x454   :  { %685 = vmatprep.subr.bf16.mxu1 %v760_v1 }
 0x457   :  { %686 = vmatpush3.bf16.msra.mxu1 %v717_v57 }
 0x458   :  { %687 = vmatprep.subr.bf16.mxu1 %v760_v1 }
 0x45b   :  { %688 = vmatpush3.bf16.msra.mxu1 %v718_v58 }
 0x45c   :  { %689 = vmatprep.subr.bf16.mxu1 %v760_v1  ;;  %v611_v1 = vld [vmem:[%s1017_s13] ss:$0 sm:$0xff] }
 0x45f   :  { %690 = vmatpush3.bf16.msra.mxu1 %v719_v59 }
 0x525   :  { %v428_v38 = vpop.f32.mrb[4].mxu1 }
 0x526   :  { %v429_v39 = vadd.f32 %v604_v37, %v428_v38  ;;  %v681_v40 = vpop.f32.mrb[5].mxu1 }
 0x527   :  { %v431_v41 = vpop.f32.mrb[6].mxu1 }
 0x528   :  { %v432_v42 = vadd.f32 %v604_v37, %v431_v41  ;;  %v682_v43 = vpop.f32.mrb[7].mxu1  ;;  %v437_v44 = vsel %vm305_vm3, %v429_v39, 0.0 }
 0x529   :  { %438 = vadd.xlane.f32.xlu1 %v437_v44 }
 0x52a   :  { %v440_v45 = vsel %vm305_vm3, %v432_v42, 0.0 }
 0x52d   :  { %441 = vadd.xlane.f32.xlu1 %v440_v45 }
 0x5b6   :  { %v439_v46 = vpop.xlane.xlu1 %438 }
 0x5b7   :  { %v443_v47 = vmul.f32 0.015625, %v439_v46 }
 0x5b9   :  { %v445_v48 = vsub.f32 %v429_v39, %v443_v47 }
 0x5ba   :  { %v442_v49 = vpop.xlane.xlu1 %441 }
 0x5bb   :  { %v444_v50 = vmul.f32 0.015625, %v442_v49  ;;  %v447_v51 = vmul.f32 %v445_v48, %v445_v48 }
 0x5bd   :  { %v446_v52 = vsub.f32 %v432_v42, %v444_v50  ;;  %v449_v53 = vsel %vm305_vm3, %v447_v51, 0.0 }
 0x5be   :  { %450 = vadd.xlane.f32.xlu0 %v449_v53 }
 0x5bf   :  { %v448_v54 = vmul.f32 %v446_v52, %v446_v52 }
 0x5c1   :  { %v452_v55 = vsel %vm305_vm3, %v448_v54, 0.0 }
 0x5c2   :  { %453 = vadd.xlane.f32.xlu1 %v452_v55 }
 0x64b   :  { %v451_v60 = vpop.xlane.xlu0 %450 }
 0x64c   :  { %v455_v61 = vmul.f32 0.015625, %v451_v60 }
 0x64e   :  { %v457_v62 = vadd.f32 1e-05, %v455_v61 }
 0x64f   :  { %v454_v63 = vpop.xlane.xlu1 %453 }
 0x650   :  { %728 = vrsqrt.f32 %v457_v62  ;;  %v456_v0 = vmul.f32 0.015625, %v454_v63 }
 0x652   :  { %v458_v2 = vadd.f32 1e-05, %v456_v0 }
 0x654   :  { %730 = vrsqrt.f32 %v458_v2 }
 0x65a   :  { %v729_v3 = vpop.eup %728 }
 0x65b   :  { %v461_v5 = vmul.f32 %v729_v3, %v445_v48 }
 0x65d   :  { %v469_v6 = vmul.f32 %v610_v4, %v461_v5 }
 0x65e   :  { %v731_v7 = vpop.eup %730 }
 0x65f   :  { %v462_v8 = vmul.f32 %v731_v7, %v446_v52  ;;  %v477_v10 = vadd.f32 %v611_v1, %v469_v6 }
 0x661   :  { %v470_v9 = vmul.f32 %v610_v4, %v462_v8  ;;  %v479_v12 = vmax.f32 %v477_v10, 0.0 }
 0x663   :  { %v478_v11 = vadd.f32 %v611_v1, %v470_v9 }
 0x665   :  { %v480_v13 = vmax.f32 %v478_v11, 0.0 }
 0x667   :  { %v481_v14 = vpack.c.bf16 %v480_v13, %v479_v12 }
 0x669   :  { %692 = vmatmul.mubr.msk.bf16.vlgmr.msra.gmra.mrb[8].mxu1 %vm305_vm3, %v481_v14 }
 0x73c   :  { %v558_v16 = vpop.f32.mrb[8].mxu1 }
 0x73d   :  { %v559_v17 = vadd.f32 %v612_v15, %v558_v16  ;;  %v693_v18 = vpop.f32.mrb[9].mxu1 }
 0x73e   :  { %v561_v19 = vpop.f32.mrb[10].mxu1 }
 0x73f   :  { %732 = vtanh.f32 %v559_v17  ;;  %v562_v20 = vadd.f32 %v612_v15, %v561_v19  ;;  %v694_v21 = vpop.f32.mrb[11].mxu1 }
 0x741   :  { %734 = vtanh.f32 %v562_v20 }
 0x749   :  { %v733_v22 = vpop.eup %732 }
 0x74a   :  { %568 = vst.msk [vmem:[#allocation2] sm:$0xff] %vm567_vm4, %v733_v22 }
 0x74b   :  { %v735_v23 = vpop.eup %734 }
 0x74c   :  { %569 = vst.msk [vmem:[#allocation2 + $0x8] sm:$0xff] %vm567_vm4, %v735_v23 }
 0x74d   :  { %574 = vsyncadd [#allocation3], 128  ;;  %s763_s12 = smov [#allocation2]  }
 0x74e   :  { %s575_s13 = sshll.u32 %s763_s12, 4  ;;  %s576_s13 = int_to_ptr.vmem [resolvable:$true] %s575_s13 }
 0x74f   :  { %s736_s7 = scalar_lea.vmem %s576_s13, 128  ;;  %s740_s15 = scalar_lea.vmem %s576_s13, 256 }
 0x750   :  { %p737_p0 = scmp.ne.s32.totalorder %s576_s13, %s736_s7  ;;  %p741_p1 = scmp.lt.s32.totalorder %s576_s13, %s576_s13 }
 0x751   :  { %p742_p2 = scmp.lt.s32.totalorder %s740_s15, %s736_s7 }
 0x753   :  { %p743_p3 = por %p742_p2, %p741_p1 }
 0x755   :  { %p744_p4 = pnand %p743_p3, %p737_p0 }
 0x757   :  { %747 = shalt.err (!%p744_p4)
}
 0x758   :  { %s748_s28 = scalar_lea.hbm %s1020_s16, 128 }
 0x759   :  { %p749_p5 = scmp.ne.s32.totalorder %s1020_s16, %s748_s28  ;;  %p752_p6 = scmp.lt.u32.totalorder %s748_s28, %s1020_s16 }
 0x75b   :  { %p754_p7 = pnand %p752_p6, %p749_p5 }
 0x75d   :  { %757 = shalt.err (!%p754_p7)
}
 0x75e   :  { %s764_s3 = smov 128   ;;  %s765_s10 = smov 8  }
 0x75f   :  { %581 = dma.vmem_to_hbm [thread:$0]  %s576_s13, 128, %s1020_s16, [#allocation3], %s764_s3, %s764_s3, %s765_s10  }
 0x760   :  { %758 = dma.done.wait [#allocation3], 256  }
 0x761   :  { %759 = vsyncadd [#allocation3], 4294967040 }
 0x762   :  { %585 = vsyncpa [#allocation3], 1 }

// kernel: tpu_custom_call.1
= control target key start
LH: loop header
LB: loop body
LE: loop exit
PB: predicated region body
PF: predicated region fallthrough
CT: control target
= control target key end

     0   :  { %s1004_s0 = inlined_call_operand.vmem [shape: f32[8,128], index: 0, kind: input, shape index: {}]   ;;  %s1005_s1 = inlined_call_operand.vmem [shape: f32[8,16], index: 1, kind: input, shape index: {}]   ;;  %s1006_s2 = inlined_call_operand.vmem [shape: bf16[128,32], index: 2, kind: input, shape index: {}]   ;;  %s1007_s3 = inlined_call_operand.vmem [shape: f32[1,32], index: 3, kind: input, shape index: {}]   ;;  %s1008_s4 = inlined_call_operand.vmem [shape: f32[1,32], index: 4, kind: input, shape index: {}]   ;;  %s1009_s5 = inlined_call_operand.vmem [shape: f32[1,32], index: 5, kind: input, shape index: {}]   ;;  %s1010_s6 = inlined_call_operand.vmem [shape: bf16[48,64], index: 6, kind: input, shape index: {}]   ;;  %s1011_s7 = inlined_call_operand.vmem [shape: f32[1,64], index: 7, kind: input, shape index: {}]   ;;  %s1012_s8 = inlined_call_operand.vmem [shape: f32[1,64], index: 8, kind: input, shape index: {}]   ;;  %s1013_s9 = inlined_call_operand.vmem [shape: f32[1,64], index: 9, kind: input, shape index: {}]   ;;  %s1014_s10 = inlined_call_operand.vmem [shape: bf16[64,64], index: 10, kind: input, shape index: {}]   ;;  %s1015_s11 = inlined_call_operand.vmem [shape: f32[1,64], index: 11, kind: input, shape index: {}]   ;;  %s1016_s12 = inlined_call_operand.vmem [shape: f32[1,64], index: 12, kind: input, shape index: {}]   ;;  %s1017_s13 = inlined_call_operand.vmem [shape: f32[1,64], index: 13, kind: input, shape index: {}]   ;;  %s1018_s14 = inlined_call_operand.vmem [shape: bf16[64,8], index: 14, kind: input, shape index: {}]   ;;  %s1019_s15 = inlined_call_operand.vmem [shape: f32[1,8], index: 15, kind: input, shape index: {}]   ;;  %s1020_s16 = inlined_call_operand.hbm [shape: f32[8,8], index: 16, kind: output, shape index: {}]  }
   0x1   :  { %1022 = sst [smem:[#allocation5_spill]] %s1004_s0 }
   0x2   :  { %21 = vsyncpa [#allocation3], 0  ;;  %v701_v0 = vld [vmem:[%s1006_s2] sm:$0xff]   ;;  %v760_v1 = vmov 0.0   ;;  %v702_v2 = vld [vmem:[%s1006_s2 + $0x8] sm:$0xff]   ;;  %vm761_vm0 = vmmov 0  }
   0x3   :  { %641 = vmatprep.subr.bf16.mxu0 %v760_v1  ;;  %661 = vmatprep.subr.bf16.mxu1 %v760_v1  ;;  %v703_v3 = vld [vmem:[%s1006_s2 + $0x10] sm:$0xff]   ;;  %v704_v4 = vld [vmem:[%s1006_s2 + $0x18] sm:$0xff]   ;;  %v705_v5 = vld [vmem:[%s1006_s2 + $0x20] sm:$0xff]   ;;  %s1023_s24 = sld [smem:[#allocation5_spill]]  ;;  %vm174_vm1 = vcmask 261120   ;;  %vm259_vm2 = vcmask 392192  }
   0x4   :  { %642 = vmatpush3.bf16.msra.mxu0 %v701_v0  ;;  %657 = vmatprep.mubr.msk.bf16.mxu0 %vm761_vm0, %v760_v1  ;;  %v706_v6 = vld [vmem:[%s1006_s2 + $0x28] sm:$0xff]   ;;  %v707_v7 = vld [vmem:[%s1006_s2 + $0x30] sm:$0xff]   ;;  %v708_v8 = vld [vmem:[%s1006_s2 + $0x38] sm:$0xff]   ;;  %vm305_vm3 = vcmask 523264   ;;  %vm567_vm4 = vcmask 64512  }
   0x5   :  { %643 = vmatprep.subr.bf16.mxu0 %v760_v1  ;;  %667 = vmatprep.mubr.msk.bf16.mxu1 %vm761_vm0, %v760_v1  ;;  %v586_v12 = vld [vmem:[%s1007_s3] ss:$0 sm:$0xff]  ;;  %v59_v22 = vld [vmem:[%s1005_s1 + $0x8] sm:$0xff]  ;;  %s762_s3 = smov 32   ;;  %v711_v36 = vld [vmem:[%s1010_s6 + $0x10] sm:$0xff]  }
   0x6   :  { %v58_v21 = vld [vmem:[%s1005_s1] sm:$0xff]  ;;  %v710_v35 = vld [vmem:[%s1010_s6 + $0x8] sm:$0xff]  }
   0x7   :  { %v221_v23 = vpack.c.bf16 %v59_v22, %v58_v21  ;;  %v709_v34 = vld [vmem:[%s1010_s6] sm:$0xff]  }
   0x8   :  { %644 = vmatpush3.bf16.msra.mxu0 %v702_v2  ;;  %662 = vmatpush3.bf16.msra.mxu1 %v709_v34  ;;  %v595_v44 = vld [vmem:[%s1008_s4] ss:$0 sm:$0xff] }
   0x9   :  { %645 = vmatprep.subr.bf16.mxu0 %v760_v1  ;;  %v55_v9 = vld [vmem:[%s1023_s24] sm:$0xff]  ;;  %v56_v10 = vld [vmem:[%s1023_s24 + $0x8] sm:$0xff]  ;;  %663 = vmatprep.subr.bf16.mxu1 %v760_v1 }
   0xa   :  { %v57_v11 = vpack.c.bf16 %v56_v10, %v55_v9  ;;  %v596_v48 = vld [vmem:[%s1009_s5] ss:$0 sm:$0xff] }
   0xb   :  { %v597_v58 = vld [vmem:[%s1011_s7] ss:$0 sm:$0xff] }
   0xc   :  { %646 = vmatpush3.bf16.msra.mxu0 %v703_v3  ;;  %664 = vmatpush3.bf16.msra.mxu1 %v710_v35 }
   0xd   :  { %647 = vmatprep.subr.bf16.mxu0 %v760_v1  ;;  %665 = vmatprep.subr.bf16.mxu1 %v760_v1 }
  0x10   :  { %648 = vmatpush3.bf16.msra.mxu0 %v704_v4  ;;  %666 = vmatpush3.bf16.msra.mxu1 %v711_v36 }
  0x11   :  { %649 = vmatprep.subr.bf16.mxu0 %v760_v1  ;;  %671 = vmatprep.subr.bf16.mxu1 %v760_v1 }
  0x14   :  { %650 = vmatpush3.bf16.msra.mxu0 %v705_v5 }
  0x15   :  { %651 = vmatprep.subr.bf16.mxu0 %v760_v1 }
  0x18   :  { %652 = vmatpush3.bf16.msra.mxu0 %v706_v6 }
  0x19   :  { %653 = vmatprep.subr.bf16.mxu0 %v760_v1 }
  0x1c   :  { %654 = vmatpush3.bf16.msra.mxu0 %v707_v7 }
  0x1d   :  { %655 = vmatprep.subr.bf16.mxu0 %v760_v1 }
  0x20   :  { %656 = vmatpush3.bf16.msra.mxu0 %v708_v8 }
  0x23   :  { %658 = vmatmul.mubr.bf16.vlgmr.msra.gmra.mrb[0].mxu0 %v57_v11 }
  0xf6   :  { %v165_v13 = vpop.f32.mrb[0].mxu0 }
  0xf7   :  { %v166_v14 = vadd.f32 %v586_v12, %v165_v13  ;;  %v659_v15 = vpop.f32.mrb[1].mxu0 }
  0xf8   :  { %v168_v16 = vpop.f32.mrb[2].mxu0  ;;  %v713_v15 = vld [vmem:[%s1014_s10 + $0x8] sm:$0xff]  }
  0xf9   :  { %v169_v17 = vadd.f32 %v586_v12, %v168_v16  ;;  %v660_v18 = vpop.f32.mrb[3].mxu0  ;;  %v175_v19 = vsel %vm174_vm1, %v166_v14, 0.0  ;;  %v714_v16 = vld [vmem:[%s1014_s10 + $0x10] sm:$0xff]  }
  0xfa   :  { %176 = vadd.xlane.f32.xlu0 %v175_v19 }
  0xfb   :  { %v178_v20 = vsel %vm174_vm1, %v169_v17, 0.0 }
  0xfe   :  { %179 = vadd.xlane.f32.xlu0 %v178_v20 }
 0x114   :  { %223 = vrot.lane.b32.xlu0 %v221_v23, %s762_s3 }
 0x187   :  { %v177_v24 = vpop.xlane.xlu0 %176 }
 0x188   :  { %v182_v25 = vmul.f32 0.03125, %v177_v24 }
 0x18a   :  { %v184_v26 = vsub.f32 %v166_v14, %v182_v25  ;;  %v712_v14 = vld [vmem:[%s1014_s10] sm:$0xff]  }
 0x18b   :  { %v180_v27 = vpop.xlane.xlu0 %179  ;;  %v602_v25 = vld [vmem:[%s1012_s8] ss:$0 sm:$0xff] }
 0x18c   :  { %v183_v28 = vmul.f32 0.03125, %v180_v27  ;;  %v186_v29 = vmul.f32 %v184_v26, %v184_v26 }
 0x18e   :  { %v185_v30 = vsub.f32 %v169_v17, %v183_v28  ;;  %v188_v31 = vsel %vm174_vm1, %v186_v29, 0.0  ;;  %v715_v17 = vld [vmem:[%s1014_s10 + $0x18] sm:$0xff]   ;;  %v603_v29 = vld [vmem:[%s1013_s9] ss:$0 sm:$0xff] }
 0x18f   :  { %189 = vadd.xlane.f32.xlu1 %v188_v31  ;;  %v224_v55 = vpop.permute.xlu0 %223 }
 0x190   :  { %v187_v32 = vmul.f32 %v185_v30, %v185_v30 }
 0x192   :  { %v191_v33 = vsel %vm174_vm1, %v187_v32, 0.0 }
 0x193   :  { %192 = vadd.xlane.f32.xlu1 %v191_v33 }
 0x21c   :  { %v190_v37 = vpop.xlane.xlu1 %189 }
 0x21d   :  { %v194_v38 = vmul.f32 0.03125, %v190_v37  ;;  %v604_v37 = vld [vmem:[%s1015_s11] ss:$0 sm:$0xff] }
 0x21f   :  { %v196_v39 = vadd.f32 1e-05, %v194_v38 }
 0x220   :  { %v193_v40 = vpop.xlane.xlu1 %192 }
 0x221   :  { %720 = vrsqrt.f32 %v196_v39  ;;  %v195_v41 = vmul.f32 0.03125, %v193_v40 }
 0x223   :  { %v197_v42 = vadd.f32 1e-05, %v195_v41 }
 0x225   :  { %722 = vrsqrt.f32 %v197_v42 }
 0x22b   :  { %v721_v43 = vpop.eup %720 }
 0x22c   :  { %v200_v45 = vmul.f32 %v721_v43, %v184_v26 }
 0x22e   :  { %v208_v46 = vmul.f32 %v595_v44, %v200_v45 }
 0x22f   :  { %v723_v47 = vpop.eup %722 }
 0x230   :  { %v201_v49 = vmul.f32 %v723_v47, %v185_v30  ;;  %v216_v51 = vadd.f32 %v596_v48, %v208_v46 }
 0x232   :  { %v209_v50 = vmul.f32 %v595_v44, %v201_v49  ;;  %v218_v53 = vmax.f32 %v216_v51, 0.0 }
 0x234   :  { %v217_v52 = vadd.f32 %v596_v48, %v209_v50 }
 0x236   :  { %v219_v54 = vmax.f32 %v217_v52, 0.0 }
 0x238   :  { %v220_v56 = vpack.c.bf16 %v219_v54, %v218_v53 }
 0x23a   :  { %v227_v57 = vsel %vm174_vm1, %v220_v56, %v224_v55  ;;  %v716_v56 = vld [vmem:[%s1018_s14] sm:$0xff]  }
 0x23b   :  { %668 = vmatmul.mubr.msk.bf16.vlgmr.msra.gmra.mrb[0].mxu1 %vm259_vm2, %v227_v57  ;;  %v717_v57 = vld [vmem:[%s1018_s14 + $0x8] sm:$0xff]  }
 0x23c   :  { %679 = vmatprep.mubr.msk.bf16.mxu1 %vm761_vm0, %v760_v1  ;;  %672 = vmatpush3.bf16.msra.mxu1 %v712_v14 }
 0x23d   :  { %673 = vmatprep.subr.bf16.mxu1 %v760_v1 }
 0x240   :  { %674 = vmatpush3.bf16.msra.mxu1 %v713_v15  ;;  %v612_v15 = vld [vmem:[%s1019_s15] ss:$0 sm:$0xff] }
 0x241   :  { %675 = vmatprep.subr.bf16.mxu1 %v760_v1 }
 0x244   :  { %676 = vmatpush3.bf16.msra.mxu1 %v714_v16 }
 0x245   :  { %677 = vmatprep.subr.bf16.mxu1 %v760_v1 }
 0x248   :  { %678 = vmatpush3.bf16.msra.mxu1 %v715_v17 }
 0x249   :  { %683 = vmatprep.subr.bf16.mxu1 %v760_v1 }
 0x30e   :  { %v296_v59 = vpop.f32.mrb[0].mxu1 }
 0x30f   :  { %v297_v60 = vadd.f32 %v597_v58, %v296_v59  ;;  %v669_v61 = vpop.f32.mrb[1].mxu1  ;;  %v719_v59 = vld [vmem:[%s1018_s14 + $0x18] sm:$0xff]  }
 0x310   :  { %v299_v62 = vpop.f32.mrb[2].mxu1 }
 0x311   :  { %v300_v63 = vadd.f32 %v597_v58, %v299_v62  ;;  %v670_v0 = vpop.f32.mrb[3].mxu1  ;;  %v306_v2 = vsel %vm305_vm3, %v297_v60, 0.0  ;;  %v718_v58 = vld [vmem:[%s1018_s14 + $0x10] sm:$0xff]  }
 0x312   :  { %307 = vadd.xlane.f32.xlu1 %v306_v2 }
 0x313   :  { %v309_v3 = vsel %vm305_vm3, %v300_v63, 0.0 }
 0x316   :  { %310 = vadd.xlane.f32.xlu1 %v309_v3 }
 0x39f   :  { %v308_v4 = vpop.xlane.xlu1 %307 }
 0x3a0   :  { %v313_v5 = vmul.f32 0.015625, %v308_v4  ;;  %v610_v4 = vld [vmem:[%s1016_s12] ss:$0 sm:$0xff] }
 0x3a2   :  { %v315_v6 = vsub.f32 %v297_v60, %v313_v5 }
 0x3a3   :  { %v311_v7 = vpop.xlane.xlu1 %310 }
 0x3a4   :  { %v314_v8 = vmul.f32 0.015625, %v311_v7  ;;  %v317_v9 = vmul.f32 %v315_v6, %v315_v6 }
 0x3a6   :  { %v316_v10 = vsub.f32 %v300_v63, %v314_v8  ;;  %v319_v11 = vsel %vm305_vm3, %v317_v9, 0.0 }
 0x3a7   :  { %320 = vadd.xlane.f32.xlu1 %v319_v11 }
 0x3a8   :  { %v318_v12 = vmul.f32 %v316_v10, %v316_v10 }
 0x3aa   :  { %v322_v13 = vsel %vm305_vm3, %v318_v12, 0.0 }
 0x3ab   :  { %323 = vadd.xlane.f32.xlu1 %v322_v13 }
 0x434   :  { %v321_v18 = vpop.xlane.xlu1 %320 }
 0x435   :  { %v325_v19 = vmul.f32 0.015625, %v321_v18 }
 0x437   :  { %v327_v20 = vadd.f32 1e-05, %v325_v19 }
 0x438   :  { %v324_v21 = vpop.xlane.xlu1 %323 }
 0x439   :  { %724 = vrsqrt.f32 %v327_v20  ;;  %v326_v22 = vmul.f32 0.015625, %v324_v21 }
 0x43b   :  { %v328_v23 = vadd.f32 1e-05, %v326_v22 }
 0x43d   :  { %726 = vrsqrt.f32 %v328_v23 }
 0x443   :  { %v725_v24 = vpop.eup %724 }
 0x444   :  { %v331_v26 = vmul.f32 %v725_v24, %v315_v6 }
 0x446   :  { %v339_v27 = vmul.f32 %v602_v25, %v331_v26 }
 0x447   :  { %v727_v28 = vpop.eup %726 }
 0x448   :  { %v332_v30 = vmul.f32 %v727_v28, %v316_v10  ;;  %v347_v32 = vadd.f32 %v603_v29, %v339_v27 }
 0x44a   :  { %v340_v31 = vmul.f32 %v602_v25, %v332_v30  ;;  %v349_v34 = vmax.f32 %v347_v32, 0.0 }
 0x44c   :  { %v348_v33 = vadd.f32 %v603_v29, %v340_v31 }
 0x44e   :  { %v350_v35 = vmax.f32 %v348_v33, 0.0 }
 0x450   :  { %v351_v36 = vpack.c.bf16 %v350_v35, %v349_v34 }
 0x452   :  { %680 = vmatmul.mubr.msk.bf16.vlgmr.msra.gmra.mrb[4].mxu1 %vm305_vm3, %v351_v36 }
 0x453   :  { %691 = vmatprep.mubr.msk.bf16.mxu1 %vm761_vm0, %v760_v1  ;;  %684 = vmatpush3.bf16.msra.mxu1 %v716_v56 }
 0x454   :  { %685 = vmatprep.subr.bf16.mxu1 %v760_v1 }
 0x457   :  { %686 = vmatpush3.bf16.msra.mxu1 %v717_v57 }
 0x458   :  { %687 = vmatprep.subr.bf16.mxu1 %v760_v1 }
 0x45b   :  { %688 = vmatpush3.bf16.msra.mxu1 %v718_v58 }
 0x45c   :  { %689 = vmatprep.subr.bf16.mxu1 %v760_v1  ;;  %v611_v1 = vld [vmem:[%s1017_s13] ss:$0 sm:$0xff] }
 0x45f   :  { %690 = vmatpush3.bf16.msra.mxu1 %v719_v59 }
 0x525   :  { %v428_v38 = vpop.f32.mrb[4].mxu1 }
 0x526   :  { %v429_v39 = vadd.f32 %v604_v37, %v428_v38  ;;  %v681_v40 = vpop.f32.mrb[5].mxu1 }
 0x527   :  { %v431_v41 = vpop.f32.mrb[6].mxu1 }
 0x528   :  { %v432_v42 = vadd.f32 %v604_v37, %v431_v41  ;;  %v682_v43 = vpop.f32.mrb[7].mxu1  ;;  %v437_v44 = vsel %vm305_vm3, %v429_v39, 0.0 }
 0x529   :  { %438 = vadd.xlane.f32.xlu1 %v437_v44 }
 0x52a   :  { %v440_v45 = vsel %vm305_vm3, %v432_v42, 0.0 }
 0x52d   :  { %441 = vadd.xlane.f32.xlu1 %v440_v45 }
 0x5b6   :  { %v439_v46 = vpop.xlane.xlu1 %438 }
 0x5b7   :  { %v443_v47 = vmul.f32 0.015625, %v439_v46 }
 0x5b9   :  { %v445_v48 = vsub.f32 %v429_v39, %v443_v47 }
 0x5ba   :  { %v442_v49 = vpop.xlane.xlu1 %441 }
 0x5bb   :  { %v444_v50 = vmul.f32 0.015625, %v442_v49  ;;  %v447_v51 = vmul.f32 %v445_v48, %v445_v48 }
 0x5bd   :  { %v446_v52 = vsub.f32 %v432_v42, %v444_v50  ;;  %v449_v53 = vsel %vm305_vm3, %v447_v51, 0.0 }
 0x5be   :  { %450 = vadd.xlane.f32.xlu0 %v449_v53 }
 0x5bf   :  { %v448_v54 = vmul.f32 %v446_v52, %v446_v52 }
 0x5c1   :  { %v452_v55 = vsel %vm305_vm3, %v448_v54, 0.0 }
 0x5c2   :  { %453 = vadd.xlane.f32.xlu1 %v452_v55 }
 0x64b   :  { %v451_v60 = vpop.xlane.xlu0 %450 }
 0x64c   :  { %v455_v61 = vmul.f32 0.015625, %v451_v60 }
 0x64e   :  { %v457_v62 = vadd.f32 1e-05, %v455_v61 }
 0x64f   :  { %v454_v63 = vpop.xlane.xlu1 %453 }
 0x650   :  { %728 = vrsqrt.f32 %v457_v62  ;;  %v456_v0 = vmul.f32 0.015625, %v454_v63 }
 0x652   :  { %v458_v2 = vadd.f32 1e-05, %v456_v0 }
 0x654   :  { %730 = vrsqrt.f32 %v458_v2 }
 0x65a   :  { %v729_v3 = vpop.eup %728 }
 0x65b   :  { %v461_v5 = vmul.f32 %v729_v3, %v445_v48 }
 0x65d   :  { %v469_v6 = vmul.f32 %v610_v4, %v461_v5 }
 0x65e   :  { %v731_v7 = vpop.eup %730 }
 0x65f   :  { %v462_v8 = vmul.f32 %v731_v7, %v446_v52  ;;  %v477_v10 = vadd.f32 %v611_v1, %v469_v6 }
 0x661   :  { %v470_v9 = vmul.f32 %v610_v4, %v462_v8  ;;  %v479_v12 = vmax.f32 %v477_v10, 0.0 }
 0x663   :  { %v478_v11 = vadd.f32 %v611_v1, %v470_v9 }
 0x665   :  { %v480_v13 = vmax.f32 %v478_v11, 0.0 }
 0x667   :  { %v481_v14 = vpack.c.bf16 %v480_v13, %v479_v12 }
 0x669   :  { %692 = vmatmul.mubr.msk.bf16.vlgmr.msra.gmra.mrb[8].mxu1 %vm305_vm3, %v481_v14 }
 0x73c   :  { %v558_v16 = vpop.f32.mrb[8].mxu1 }
 0x73d   :  { %v559_v17 = vadd.f32 %v612_v15, %v558_v16  ;;  %v693_v18 = vpop.f32.mrb[9].mxu1 }
 0x73e   :  { %v561_v19 = vpop.f32.mrb[10].mxu1 }
 0x73f   :  { %732 = vtanh.f32 %v559_v17  ;;  %v562_v20 = vadd.f32 %v612_v15, %v561_v19  ;;  %v694_v21 = vpop.f32.mrb[11].mxu1 }
 0x741   :  { %734 = vtanh.f32 %v562_v20 }
 0x749   :  { %v733_v22 = vpop.eup %732 }
 0x74a   :  { %568 = vst.msk [vmem:[#allocation2] sm:$0xff] %vm567_vm4, %v733_v22 }
 0x74b   :  { %v735_v23 = vpop.eup %734 }
 0x74c   :  { %569 = vst.msk [vmem:[#allocation2 + $0x8] sm:$0xff] %vm567_vm4, %v735_v23 }
 0x74d   :  { %574 = vsyncadd [#allocation3], 128  ;;  %s763_s12 = smov [#allocation2]  }
 0x74e   :  { %s575_s13 = sshll.u32 %s763_s12, 4  ;;  %s576_s13 = int_to_ptr.vmem [resolvable:$true] %s575_s13 }
 0x74f   :  { %s736_s7 = scalar_lea.vmem %s576_s13, 128  ;;  %s740_s15 = scalar_lea.vmem %s576_s13, 256 }
 0x750   :  { %p737_p0 = scmp.ne.s32.totalorder %s576_s13, %s736_s7  ;;  %p741_p1 = scmp.lt.s32.totalorder %s576_s13, %s576_s13 }
 0x751   :  { %p742_p2 = scmp.lt.s32.totalorder %s740_s15, %s736_s7 }
 0x753   :  { %p743_p3 = por %p742_p2, %p741_p1 }
 0x755   :  { %p744_p4 = pnand %p743_p3, %p737_p0 }
 0x757   :  { %747 = shalt.err (!%p744_p4)
}
 0x758   :  { %s748_s28 = scalar_lea.hbm %s1020_s16, 128 }
 0x759   :  { %p749_p5 = scmp.ne.s32.totalorder %s1020_s16, %s748_s28  ;;  %p752_p6 = scmp.lt.u32.totalorder %s748_s28, %s1020_s16 }
 0x75b   :  { %p754_p7 = pnand %p752_p6, %p749_p5 }
 0x75d   :  { %757 = shalt.err (!%p754_p7)
}
 0x75e   :  { %s764_s3 = smov 128   ;;  %s765_s10 = smov 8  }
 0x75f   :  { %581 = dma.vmem_to_hbm [thread:$0]  %s576_s13, 128, %s1020_s16, [#allocation3], %s764_s3, %s764_s3, %s765_s10  }
 0x760   :  { %758 = dma.done.wait [#allocation3], 256  }
 0x761   :  { %759 = vsyncadd [#allocation3], 4294967040 }
 0x762   :  { %585 = vsyncpa [#allocation3], 1 }

</bundles_post_ra>
